<compile_context>
chip_gen: v7x
topology: tpu7x:2x2x1
jax: 0.10.0
libtpu: 0.0.40
codegen_flags: <defaults>
</compile_context>

<pallas_src>
import jax
import jax.numpy as jnp
import numpy as np
from jax import lax
from jax.experimental import pallas as pl
from jax.experimental.pallas import tpu as pltpu

EPS = 1e-5


def _fold_conv_bn(w_oihw, bias, gamma, beta, mean, var):
    """Fold eval-mode BatchNorm into the conv.

    Returns:
      w_taps : (9, Cout, Cin)  per-tap matmul weights with the BN scale folded
               in, tap index t = kh*3 + kw.
      shift  : (Cout, 1)       folded per-channel shift (conv bias + BN).
    """
    cout, cin, kh, kw = w_oihw.shape
    scale = gamma / jnp.sqrt(var + EPS)                         # (Cout,)
    w_taps = jnp.transpose(w_oihw, (2, 3, 0, 1)).reshape(kh * kw, cout, cin)
    w_taps = w_taps * scale[None, :, None]
    shift = (bias - mean) * scale + beta                        # (Cout,)
    return (w_taps.astype(jnp.float32),
            shift.reshape(cout, 1).astype(jnp.float32))


def refinement_block(x_nchw, p):
    """x_nchw: (N, C, H, W) float32.  Matches RefinementBlock.forward (eval)."""
    N, C, H, W = x_nchw.shape
    L = H * W
    # Zero-halo width on each side of the flat spatial axis; a multiple of 128
    # so the activation store into the padded scratch is lane-aligned.
    P = ((W + 1 + 127) // 128) * 128
    Lp = P + L + P

    # NCHW -> (N, C, H*W): space on lanes (dense), channels on sublanes.
    x = x_nchw.reshape(N, C, L)

    w1, t1 = _fold_conv_bn(p["w1"], p["b1"], p["g1"], p["beta1"], p["m1"], p["v1"])
    w2, t2 = _fold_conv_bn(p["w2"], p["b2"], p["g2"], p["beta2"], p["m2"], p["v2"])

    # W-direction edge masks over the flat spatial axis:
    #   row 0: keep where the (w-1) neighbour exists, row 1: where (w+1) does.
    w_idx = jnp.arange(L, dtype=jnp.int32) % W
    masks = jnp.stack([(w_idx >= 1).astype(jnp.float32),
                       (w_idx <= W - 2).astype(jnp.float32)], axis=0)   # (2, L)

    def kernel(x_ref, m_ref, w1_ref, t1_ref, w2_ref, t2_ref, o_ref,
               buf_a, buf_b):
        # Zero the flat halos every grid step: 4 aligned full-lane stores,
        # ~C*P elements each.  NOT under pl.when(program_id == 0): scratch is
        # per-TensorCore and the "parallel" batch axis may be split across
        # cores (megacore), so a first-iteration guard could leave a core's
        # halo uninitialized.
        zpad = jnp.zeros((C, P), jnp.float32)
        buf_a[:, 0:P] = zpad
        buf_a[:, P + L:Lp] = zpad
        buf_b[:, 0:P] = zpad
        buf_b[:, P + L:Lp] = zpad

        m_left = m_ref[0:1, :]      # (1, L)
        m_right = m_ref[1:2, :]     # (1, L)

        def conv3x3(buf, w_ref, t_ref):
            # 3x3 conv = 9 accumulated MXU matmuls on lane-shifted views of
            # the flat zero-padded activation (no im2col materialization).
            acc = jnp.zeros((C, L), jnp.float32)
            for dh in range(3):
                for dw in range(3):
                    t = dh * 3 + dw
                    k = (dh - 1) * W + (dw - 1)
                    rhs = buf[:, P + k:P + k + L]               # (C, L)
                    d = jnp.dot(w_ref[t], rhs,
                                preferred_element_type=jnp.float32)
                    if dw == 0:          # (w-1) neighbour invalid at w == 0
                        d = d * m_left
                    elif dw == 2:        # (w+1) neighbour invalid at w == W-1
                        d = d * m_right
                    acc = acc + d
            return acc + t_ref[...]                             # folded BN shift

        x_act = x_ref[0].astype(jnp.float32)                    # (C, L)

        # ---- conv1 + BN1 (folded) + ReLU ----
        buf_a[:, P:P + L] = x_act
        y1 = jnp.maximum(conv3x3(buf_a, w1_ref, t1_ref), 0.0)

        # ---- conv2 + BN2 (folded) ----
        buf_b[:, P:P + L] = y1
        y2 = conv3x3(buf_b, w2_ref, t2_ref)

        # ---- residual add + final ReLU (lane-dense store) ----
        o_ref[0] = jnp.maximum(x_act + y2, 0.0).astype(o_ref.dtype)

    # TODO(synk): for large H*W (or large C) add a grid axis tiling the flat
    # spatial dim with a (W+1)-lane halo (recomputing one boundary row for
    # conv2) so the (C, Lp) scratches and the (C, L) accumulator stay within
    # v7x's 64 MiB VMEM; at these shapes one whole image per grid step is
    # already the "biggest tile that fits".
    out = pl.pallas_call(
        kernel,
        out_shape=jax.ShapeDtypeStruct((N, C, L), x.dtype),
        grid=(N,),
        in_specs=[
            pl.BlockSpec((1, C, L), lambda n: (n, 0, 0)),       # activation
            pl.BlockSpec((2, L), lambda n: (0, 0)),             # edge masks
            pl.BlockSpec((9, C, C), lambda n: (0, 0, 0)),       # conv1 taps
            pl.BlockSpec((C, 1), lambda n: (0, 0)),             # conv1 shift
            pl.BlockSpec((9, C, C), lambda n: (0, 0, 0)),       # conv2 taps
            pl.BlockSpec((C, 1), lambda n: (0, 0)),             # conv2 shift
        ],
        out_specs=pl.BlockSpec((1, C, L), lambda n: (n, 0, 0)),
        scratch_shapes=[
            pltpu.VMEM((C, Lp), jnp.float32),   # flat-padded act (conv1 input)
            pltpu.VMEM((C, Lp), jnp.float32),   # flat-padded act (conv2 input)
        ],
        compiler_params=pltpu.CompilerParams(
            dimension_semantics=("parallel",),
            vmem_limit_bytes=32 * 1024 * 1024),
    )(x, masks, w1, t1, w2, t2)

    return out.reshape(N, C, H, W)


def _ref_forward(x, p):
    """Pure-JAX reference matching PyTorch eval-mode semantics (NCHW)."""
    def conv(x, w, b):
        y = lax.conv_general_dilated(
            x, w, window_strides=(1, 1), padding=((1, 1), (1, 1)),
            dimension_numbers=("NCHW", "OIHW", "NCHW"))
        return y + b[None, :, None, None]

    def bn(x, g, be, m, v):
        return ((x - m[None, :, None, None]) /
                jnp.sqrt(v[None, :, None, None] + EPS) *
                g[None, :, None, None] + be[None, :, None, None])

    h = jax.nn.relu(bn(conv(x, p["w1"], p["b1"]), p["g1"], p["beta1"], p["m1"], p["v1"]))
    h = bn(conv(h, p["w2"], p["b2"]), p["g2"], p["beta2"], p["m2"], p["v2"])
    return jax.nn.relu(x + h)


if __name__ == "__main__":
    N, C, H, W = 2, 32, 16, 16
    key = jax.random.PRNGKey(0)
    ks = jax.random.split(key, 16)

    params = {
        "w1": 0.1 * jax.random.normal(ks[0], (C, C, 3, 3), jnp.float32),
        "b1": 0.1 * jax.random.normal(ks[1], (C,), jnp.float32),
        "g1": 1.0 + 0.1 * jax.random.normal(ks[2], (C,), jnp.float32),
        "beta1": 0.1 * jax.random.normal(ks[3], (C,), jnp.float32),
        "m1": 0.05 * jax.random.normal(ks[4], (C,), jnp.float32),
        "v1": 1.0 + 0.1 * jax.random.uniform(ks[5], (C,), jnp.float32),
        "w2": 0.1 * jax.random.normal(ks[6], (C, C, 3, 3), jnp.float32),
        "b2": 0.1 * jax.random.normal(ks[7], (C,), jnp.float32),
        "g2": 1.0 + 0.1 * jax.random.normal(ks[8], (C,), jnp.float32),
        "beta2": 0.1 * jax.random.normal(ks[9], (C,), jnp.float32),
        "m2": 0.05 * jax.random.normal(ks[10], (C,), jnp.float32),
        "v2": 1.0 + 0.1 * jax.random.uniform(ks[11], (C,), jnp.float32),
    }

    x = jax.random.normal(ks[12], (N, C, H, W), jnp.float32)

    out = refinement_block(x, params)
    out = jax.block_until_ready(out)

    ref = jax.block_until_ready(_ref_forward(x, params))
    np.testing.assert_allclose(np.asarray(out), np.asarray(ref),
                               rtol=1e-3, atol=1e-3)
    print("KERNEL_OK")
</pallas_src>

<mosaic_0001>
module attributes {stable_mosaic.version = 11 : i64} {
  func.func @kernel(%arg0: i32, %arg1: memref<1x32x256xf32, #tpu.memory_space<vmem>>, %arg2: memref<2x256xf32, #tpu.memory_space<vmem>>, %arg3: memref<9x32x32xf32, #tpu.memory_space<vmem>>, %arg4: memref<32x1xf32, #tpu.memory_space<vmem>>, %arg5: memref<9x32x32xf32, #tpu.memory_space<vmem>>, %arg6: memref<32x1xf32, #tpu.memory_space<vmem>>, %arg7: memref<1x32x256xf32, #tpu.memory_space<vmem>>, %arg8: memref<32x512xf32, #tpu.memory_space<vmem>>, %arg9: memref<32x512xf32, #tpu.memory_space<vmem>>) attributes {dimension_semantics = [#tpu.dimension_semantics<parallel>], iteration_bounds = array<i64: 2>, scalar_prefetch = 0 : i64, scratch_operands = 2 : i64, tpu.core_type = #tpu.core_type<tc>, window_params = [{transform_indices = @transform_0, window_bounds = array<i64: 1, 32, 256>}, {pipeline_mode = #tpu.pipeline_mode<synchronous>, transform_indices = @transform_1, window_bounds = array<i64: 2, 256>}, {pipeline_mode = #tpu.pipeline_mode<synchronous>, transform_indices = @transform_2, window_bounds = array<i64: 9, 32, 32>}, {pipeline_mode = #tpu.pipeline_mode<synchronous>, transform_indices = @transform_3, window_bounds = array<i64: 32, 1>}, {pipeline_mode = #tpu.pipeline_mode<synchronous>, transform_indices = @transform_4, window_bounds = array<i64: 9, 32, 32>}, {pipeline_mode = #tpu.pipeline_mode<synchronous>, transform_indices = @transform_5, window_bounds = array<i64: 32, 1>}, {transform_indices = @transform_6, window_bounds = array<i64: 1, 32, 256>}]} {
    %cst = arith.constant 0.000000e+00 : f32
    %0 = vector.broadcast %cst : f32 to vector<32x128xf32>
    %c0 = arith.constant 0 : index
    %c0_0 = arith.constant 0 : index
    %1 = vector.load %arg8[%c0, %c0_0] : memref<32x512xf32, #tpu.memory_space<vmem>>, vector<32x128xf32>
    tpu.vector_store %arg8[%c0, %c0_0], %0 {strides = array<i32>} : memref<32x512xf32, #tpu.memory_space<vmem>>, vector<32x128xf32>,
    %c0_1 = arith.constant 0 : index
    %c384 = arith.constant 384 : index
    %2 = vector.load %arg8[%c0_1, %c384] : memref<32x512xf32, #tpu.memory_space<vmem>>, vector<32x128xf32>
    tpu.vector_store %arg8[%c0_1, %c384], %0 {strides = array<i32>} : memref<32x512xf32, #tpu.memory_space<vmem>>, vector<32x128xf32>,
    %c0_2 = arith.constant 0 : index
    %c0_3 = arith.constant 0 : index
    %3 = vector.load %arg9[%c0_2, %c0_3] : memref<32x512xf32, #tpu.memory_space<vmem>>, vector<32x128xf32>
    tpu.vector_store %arg9[%c0_2, %c0_3], %0 {strides = array<i32>} : memref<32x512xf32, #tpu.memory_space<vmem>>, vector<32x128xf32>,
    %c0_4 = arith.constant 0 : index
    %c384_5 = arith.constant 384 : index
    %4 = vector.load %arg9[%c0_4, %c384_5] : memref<32x512xf32, #tpu.memory_space<vmem>>, vector<32x128xf32>
    tpu.vector_store %arg9[%c0_4, %c384_5], %0 {strides = array<i32>} : memref<32x512xf32, #tpu.memory_space<vmem>>, vector<32x128xf32>,
    %c0_6 = arith.constant 0 : index
    %c0_7 = arith.constant 0 : index
    %5 = vector.load %arg2[%c0_6, %c0_7] : memref<2x256xf32, #tpu.memory_space<vmem>>, vector<1x256xf32>
    %c1 = arith.constant 1 : index
    %c0_8 = arith.constant 0 : index
    %6 = vector.load %arg2[%c1, %c0_8] : memref<2x256xf32, #tpu.memory_space<vmem>>, vector<1x256xf32>
    %c0_9 = arith.constant 0 : index
    %c0_10 = arith.constant 0 : index
    %c0_11 = arith.constant 0 : index
    %7 = vector.load %arg1[%c0_9, %c0_10, %c0_11] : memref<1x32x256xf32, #tpu.memory_space<vmem>>, vector<1x32x256xf32>
    %8 = vector.shape_cast %7 : vector<1x32x256xf32> to vector<32x256xf32>
    %c0_12 = arith.constant 0 : index
    %c128 = arith.constant 128 : index
    %9 = vector.load %arg8[%c0_12, %c128] : memref<32x512xf32, #tpu.memory_space<vmem>>, vector<32x256xf32>
    tpu.vector_store %arg8[%c0_12, %c128], %8 {strides = array<i32>} : memref<32x512xf32, #tpu.memory_space<vmem>>, vector<32x256xf32>,
    %cst_13 = arith.constant 0.000000e+00 : f32
    %10 = vector.broadcast %cst_13 : f32 to vector<32x256xf32>
    %c0_14 = arith.constant 0 : index
    %c111 = arith.constant 111 : index
    %11 = vector.load %arg8[%c0_14, %c111] : memref<32x512xf32, #tpu.memory_space<vmem>>, vector<32x256xf32>
    %c0_15 = arith.constant 0 : index
    %c0_16 = arith.constant 0 : index
    %c0_17 = arith.constant 0 : index
    %12 = vector.load %arg3[%c0_15, %c0_16, %c0_17] : memref<9x32x32xf32, #tpu.memory_space<vmem>>, vector<1x32x32xf32>
    %13 = vector.shape_cast %12 : vector<1x32x32xf32> to vector<32x32xf32>
    %cst_18 = arith.constant dense<0.000000e+00> : vector<32x256xf32>
    %14 = tpu.matmul %13, %11, %cst_18 {dimension_numbers = #tpu.dot_dimension_numbers<[1], [0], [0], [1], [0, 0, 1, 1], [], []>} : vector<32x32xf32>, vector<32x256xf32>, vector<32x256xf32> -> vector<32x256xf32>
    %15 = vector.broadcast %5 : vector<1x256xf32> to vector<32x256xf32>
    %16 = arith.mulf %14, %15 : vector<32x256xf32>
    %17 = arith.addf %10, %16 : vector<32x256xf32>
    %c0_19 = arith.constant 0 : index
    %c112 = arith.constant 112 : index
    %18 = vector.load %arg8[%c0_19, %c112] : memref<32x512xf32, #tpu.memory_space<vmem>>, vector<32x256xf32>
    %c1_20 = arith.constant 1 : index
    %c0_21 = arith.constant 0 : index
    %c0_22 = arith.constant 0 : index
    %19 = vector.load %arg3[%c1_20, %c0_21, %c0_22] : memref<9x32x32xf32, #tpu.memory_space<vmem>>, vector<1x32x32xf32>
    %20 = vector.shape_cast %19 : vector<1x32x32xf32> to vector<32x32xf32>
    %cst_23 = arith.constant dense<0.000000e+00> : vector<32x256xf32>
    %21 = tpu.matmul %20, %18, %cst_23 {dimension_numbers = #tpu.dot_dimension_numbers<[1], [0], [0], [1], [0, 0, 1, 1], [], []>} : vector<32x32xf32>, vector<32x256xf32>, vector<32x256xf32> -> vector<32x256xf32>
    %22 = arith.addf %17, %21 : vector<32x256xf32>
    %c0_24 = arith.constant 0 : index
    %c113 = arith.constant 113 : index
    %23 = vector.load %arg8[%c0_24, %c113] : memref<32x512xf32, #tpu.memory_space<vmem>>, vector<32x256xf32>
    %c2 = arith.constant 2 : index
    %c0_25 = arith.constant 0 : index
    %c0_26 = arith.constant 0 : index
    %24 = vector.load %arg3[%c2, %c0_25, %c0_26] : memref<9x32x32xf32, #tpu.memory_space<vmem>>, vector<1x32x32xf32>
    %25 = vector.shape_cast %24 : vector<1x32x32xf32> to vector<32x32xf32>
    %cst_27 = arith.constant dense<0.000000e+00> : vector<32x256xf32>
    %26 = tpu.matmul %25, %23, %cst_27 {dimension_numbers = #tpu.dot_dimension_numbers<[1], [0], [0], [1], [0, 0, 1, 1], [], []>} : vector<32x32xf32>, vector<32x256xf32>, vector<32x256xf32> -> vector<32x256xf32>
    %27 = vector.broadcast %6 : vector<1x256xf32> to vector<32x256xf32>
    %28 = arith.mulf %26, %27 : vector<32x256xf32>
    %29 = arith.addf %22, %28 : vector<32x256xf32>
    %c0_28 = arith.constant 0 : index
    %c127 = arith.constant 127 : index
    %30 = vector.load %arg8[%c0_28, %c127] : memref<32x512xf32, #tpu.memory_space<vmem>>, vector<32x256xf32>
    %c3 = arith.constant 3 : index
    %c0_29 = arith.constant 0 : index
    %c0_30 = arith.constant 0 : index
    %31 = vector.load %arg3[%c3, %c0_29, %c0_30] : memref<9x32x32xf32, #tpu.memory_space<vmem>>, vector<1x32x32xf32>
    %32 = vector.shape_cast %31 : vector<1x32x32xf32> to vector<32x32xf32>
    %cst_31 = arith.constant dense<0.000000e+00> : vector<32x256xf32>
    %33 = tpu.matmul %32, %30, %cst_31 {dimension_numbers = #tpu.dot_dimension_numbers<[1], [0], [0], [1], [0, 0, 1, 1], [], []>} : vector<32x32xf32>, vector<32x256xf32>, vector<32x256xf32> -> vector<32x256xf32>
    %34 = vector.broadcast %5 : vector<1x256xf32> to vector<32x256xf32>
    %35 = arith.mulf %33, %34 : vector<32x256xf32>
    %36 = arith.addf %29, %35 : vector<32x256xf32>
    %c0_32 = arith.constant 0 : index
    %c128_33 = arith.constant 128 : index
    %37 = vector.load %arg8[%c0_32, %c128_33] : memref<32x512xf32, #tpu.memory_space<vmem>>, vector<32x256xf32>
    %c4 = arith.constant 4 : index
    %c0_34 = arith.constant 0 : index
    %c0_35 = arith.constant 0 : index
    %38 = vector.load %arg3[%c4, %c0_34, %c0_35] : memref<9x32x32xf32, #tpu.memory_space<vmem>>, vector<1x32x32xf32>
    %39 = vector.shape_cast %38 : vector<1x32x32xf32> to vector<32x32xf32>
    %cst_36 = arith.constant dense<0.000000e+00> : vector<32x256xf32>
    %40 = tpu.matmul %39, %37, %cst_36 {dimension_numbers = #tpu.dot_dimension_numbers<[1], [0], [0], [1], [0, 0, 1, 1], [], []>} : vector<32x32xf32>, vector<32x256xf32>, vector<32x256xf32> -> vector<32x256xf32>
    %41 = arith.addf %36, %40 : vector<32x256xf32>
    %c0_37 = arith.constant 0 : index
    %c129 = arith.constant 129 : index
    %42 = vector.load %arg8[%c0_37, %c129] : memref<32x512xf32, #tpu.memory_space<vmem>>, vector<32x256xf32>
    %c5 = arith.constant 5 : index
    %c0_38 = arith.constant 0 : index
    %c0_39 = arith.constant 0 : index
    %43 = vector.load %arg3[%c5, %c0_38, %c0_39] : memref<9x32x32xf32, #tpu.memory_space<vmem>>, vector<1x32x32xf32>
    %44 = vector.shape_cast %43 : vector<1x32x32xf32> to vector<32x32xf32>
    %cst_40 = arith.constant dense<0.000000e+00> : vector<32x256xf32>
    %45 = tpu.matmul %44, %42, %cst_40 {dimension_numbers = #tpu.dot_dimension_numbers<[1], [0], [0], [1], [0, 0, 1, 1], [], []>} : vector<32x32xf32>, vector<32x256xf32>, vector<32x256xf32> -> vector<32x256xf32>
    %46 = vector.broadcast %6 : vector<1x256xf32> to vector<32x256xf32>
    %47 = arith.mulf %45, %46 : vector<32x256xf32>
    %48 = arith.addf %41, %47 : vector<32x256xf32>
    %c0_41 = arith.constant 0 : index
    %c143 = arith.constant 143 : index
    %49 = vector.load %arg8[%c0_41, %c143] : memref<32x512xf32, #tpu.memory_space<vmem>>, vector<32x256xf32>
    %c6 = arith.constant 6 : index
    %c0_42 = arith.constant 0 : index
    %c0_43 = arith.constant 0 : index
    %50 = vector.load %arg3[%c6, %c0_42, %c0_43] : memref<9x32x32xf32, #tpu.memory_space<vmem>>, vector<1x32x32xf32>
    %51 = vector.shape_cast %50 : vector<1x32x32xf32> to vector<32x32xf32>
    %cst_44 = arith.constant dense<0.000000e+00> : vector<32x256xf32>
    %52 = tpu.matmul %51, %49, %cst_44 {dimension_numbers = #tpu.dot_dimension_numbers<[1], [0], [0], [1], [0, 0, 1, 1], [], []>} : vector<32x32xf32>, vector<32x256xf32>, vector<32x256xf32> -> vector<32x256xf32>
    %53 = vector.broadcast %5 : vector<1x256xf32> to vector<32x256xf32>
    %54 = arith.mulf %52, %53 : vector<32x256xf32>
    %55 = arith.addf %48, %54 : vector<32x256xf32>
    %c0_45 = arith.constant 0 : index
    %c144 = arith.constant 144 : index
    %56 = vector.load %arg8[%c0_45, %c144] : memref<32x512xf32, #tpu.memory_space<vmem>>, vector<32x256xf32>
    %c7 = arith.constant 7 : index
    %c0_46 = arith.constant 0 : index
    %c0_47 = arith.constant 0 : index
    %57 = vector.load %arg3[%c7, %c0_46, %c0_47] : memref<9x32x32xf32, #tpu.memory_space<vmem>>, vector<1x32x32xf32>
    %58 = vector.shape_cast %57 : vector<1x32x32xf32> to vector<32x32xf32>
    %cst_48 = arith.constant dense<0.000000e+00> : vector<32x256xf32>
    %59 = tpu.matmul %58, %56, %cst_48 {dimension_numbers = #tpu.dot_dimension_numbers<[1], [0], [0], [1], [0, 0, 1, 1], [], []>} : vector<32x32xf32>, vector<32x256xf32>, vector<32x256xf32> -> vector<32x256xf32>
    %60 = arith.addf %55, %59 : vector<32x256xf32>
    %c0_49 = arith.constant 0 : index
    %c145 = arith.constant 145 : index
    %61 = vector.load %arg8[%c0_49, %c145] : memref<32x512xf32, #tpu.memory_space<vmem>>, vector<32x256xf32>
    %c8 = arith.constant 8 : index
    %c0_50 = arith.constant 0 : index
    %c0_51 = arith.constant 0 : index
    %62 = vector.load %arg3[%c8, %c0_50, %c0_51] : memref<9x32x32xf32, #tpu.memory_space<vmem>>, vector<1x32x32xf32>
    %63 = vector.shape_cast %62 : vector<1x32x32xf32> to vector<32x32xf32>
    %cst_52 = arith.constant dense<0.000000e+00> : vector<32x256xf32>
    %64 = tpu.matmul %63, %61, %cst_52 {dimension_numbers = #tpu.dot_dimension_numbers<[1], [0], [0], [1], [0, 0, 1, 1], [], []>} : vector<32x32xf32>, vector<32x256xf32>, vector<32x256xf32> -> vector<32x256xf32>
    %65 = vector.broadcast %6 : vector<1x256xf32> to vector<32x256xf32>
    %66 = arith.mulf %64, %65 : vector<32x256xf32>
    %67 = arith.addf %60, %66 : vector<32x256xf32>
    %c0_53 = arith.constant 0 : index
    %c0_54 = arith.constant 0 : index
    %68 = vector.load %arg4[%c0_53, %c0_54] : memref<32x1xf32, #tpu.memory_space<vmem>>, vector<32x1xf32>
    %69 = vector.broadcast %68 : vector<32x1xf32> to vector<32x256xf32>
    %70 = arith.addf %67, %69 : vector<32x256xf32>
    %cst_55 = arith.constant 0.000000e+00 : f32
    %71 = vector.broadcast %cst_55 : f32 to vector<32x256xf32>
    %72 = arith.maximumf %70, %71 : vector<32x256xf32>
    %c0_56 = arith.constant 0 : index
    %c128_57 = arith.constant 128 : index
    %73 = vector.load %arg9[%c0_56, %c128_57] : memref<32x512xf32, #tpu.memory_space<vmem>>, vector<32x256xf32>
    tpu.vector_store %arg9[%c0_56, %c128_57], %72 {strides = array<i32>} : memref<32x512xf32, #tpu.memory_space<vmem>>, vector<32x256xf32>,
    %cst_58 = arith.constant 0.000000e+00 : f32
    %74 = vector.broadcast %cst_58 : f32 to vector<32x256xf32>
    %c0_59 = arith.constant 0 : index
    %c111_60 = arith.constant 111 : index
    %75 = vector.load %arg9[%c0_59, %c111_60] : memref<32x512xf32, #tpu.memory_space<vmem>>, vector<32x256xf32>
    %c0_61 = arith.constant 0 : index
    %c0_62 = arith.constant 0 : index
    %c0_63 = arith.constant 0 : index
    %76 = vector.load %arg5[%c0_61, %c0_62, %c0_63] : memref<9x32x32xf32, #tpu.memory_space<vmem>>, vector<1x32x32xf32>
    %77 = vector.shape_cast %76 : vector<1x32x32xf32> to vector<32x32xf32>
    %cst_64 = arith.constant dense<0.000000e+00> : vector<32x256xf32>
    %78 = tpu.matmul %77, %75, %cst_64 {dimension_numbers = #tpu.dot_dimension_numbers<[1], [0], [0], [1], [0, 0, 1, 1], [], []>} : vector<32x32xf32>, vector<32x256xf32>, vector<32x256xf32> -> vector<32x256xf32>
    %79 = vector.broadcast %5 : vector<1x256xf32> to vector<32x256xf32>
    %80 = arith.mulf %78, %79 : vector<32x256xf32>
    %81 = arith.addf %74, %80 : vector<32x256xf32>
    %c0_65 = arith.constant 0 : index
    %c112_66 = arith.constant 112 : index
    %82 = vector.load %arg9[%c0_65, %c112_66] : memref<32x512xf32, #tpu.memory_space<vmem>>, vector<32x256xf32>
    %c1_67 = arith.constant 1 : index
    %c0_68 = arith.constant 0 : index
    %c0_69 = arith.constant 0 : index
    %83 = vector.load %arg5[%c1_67, %c0_68, %c0_69] : memref<9x32x32xf32, #tpu.memory_space<vmem>>, vector<1x32x32xf32>
    %84 = vector.shape_cast %83 : vector<1x32x32xf32> to vector<32x32xf32>
    %cst_70 = arith.constant dense<0.000000e+00> : vector<32x256xf32>
    %85 = tpu.matmul %84, %82, %cst_70 {dimension_numbers = #tpu.dot_dimension_numbers<[1], [0], [0], [1], [0, 0, 1, 1], [], []>} : vector<32x32xf32>, vector<32x256xf32>, vector<32x256xf32> -> vector<32x256xf32>
    %86 = arith.addf %81, %85 : vector<32x256xf32>
    %c0_71 = arith.constant 0 : index
    %c113_72 = arith.constant 113 : index
    %87 = vector.load %arg9[%c0_71, %c113_72] : memref<32x512xf32, #tpu.memory_space<vmem>>, vector<32x256xf32>
    %c2_73 = arith.constant 2 : index
    %c0_74 = arith.constant 0 : index
    %c0_75 = arith.constant 0 : index
    %88 = vector.load %arg5[%c2_73, %c0_74, %c0_75] : memref<9x32x32xf32, #tpu.memory_space<vmem>>, vector<1x32x32xf32>
    %89 = vector.shape_cast %88 : vector<1x32x32xf32> to vector<32x32xf32>
    %cst_76 = arith.constant dense<0.000000e+00> : vector<32x256xf32>
    %90 = tpu.matmul %89, %87, %cst_76 {dimension_numbers = #tpu.dot_dimension_numbers<[1], [0], [0], [1], [0, 0, 1, 1], [], []>} : vector<32x32xf32>, vector<32x256xf32>, vector<32x256xf32> -> vector<32x256xf32>
    %91 = vector.broadcast %6 : vector<1x256xf32> to vector<32x256xf32>
    %92 = arith.mulf %90, %91 : vector<32x256xf32>
    %93 = arith.addf %86, %92 : vector<32x256xf32>
    %c0_77 = arith.constant 0 : index
    %c127_78 = arith.constant 127 : index
    %94 = vector.load %arg9[%c0_77, %c127_78] : memref<32x512xf32, #tpu.memory_space<vmem>>, vector<32x256xf32>
    %c3_79 = arith.constant 3 : index
    %c0_80 = arith.constant 0 : index
    %c0_81 = arith.constant 0 : index
    %95 = vector.load %arg5[%c3_79, %c0_80, %c0_81] : memref<9x32x32xf32, #tpu.memory_space<vmem>>, vector<1x32x32xf32>
    %96 = vector.shape_cast %95 : vector<1x32x32xf32> to vector<32x32xf32>
    %cst_82 = arith.constant dense<0.000000e+00> : vector<32x256xf32>
    %97 = tpu.matmul %96, %94, %cst_82 {dimension_numbers = #tpu.dot_dimension_numbers<[1], [0], [0], [1], [0, 0, 1, 1], [], []>} : vector<32x32xf32>, vector<32x256xf32>, vector<32x256xf32> -> vector<32x256xf32>
    %98 = vector.broadcast %5 : vector<1x256xf32> to vector<32x256xf32>
    %99 = arith.mulf %97, %98 : vector<32x256xf32>
    %100 = arith.addf %93, %99 : vector<32x256xf32>
    %c0_83 = arith.constant 0 : index
    %c128_84 = arith.constant 128 : index
    %101 = vector.load %arg9[%c0_83, %c128_84] : memref<32x512xf32, #tpu.memory_space<vmem>>, vector<32x256xf32>
    %c4_85 = arith.constant 4 : index
    %c0_86 = arith.constant 0 : index
    %c0_87 = arith.constant 0 : index
    %102 = vector.load %arg5[%c4_85, %c0_86, %c0_87] : memref<9x32x32xf32, #tpu.memory_space<vmem>>, vector<1x32x32xf32>
    %103 = vector.shape_cast %102 : vector<1x32x32xf32> to vector<32x32xf32>
    %cst_88 = arith.constant dense<0.000000e+00> : vector<32x256xf32>
    %104 = tpu.matmul %103, %101, %cst_88 {dimension_numbers = #tpu.dot_dimension_numbers<[1], [0], [0], [1], [0, 0, 1, 1], [], []>} : vector<32x32xf32>, vector<32x256xf32>, vector<32x256xf32> -> vector<32x256xf32>
    %105 = arith.addf %100, %104 : vector<32x256xf32>
    %c0_89 = arith.constant 0 : index
    %c129_90 = arith.constant 129 : index
    %106 = vector.load %arg9[%c0_89, %c129_90] : memref<32x512xf32, #tpu.memory_space<vmem>>, vector<32x256xf32>
    %c5_91 = arith.constant 5 : index
    %c0_92 = arith.constant 0 : index
    %c0_93 = arith.constant 0 : index
    %107 = vector.load %arg5[%c5_91, %c0_92, %c0_93] : memref<9x32x32xf32, #tpu.memory_space<vmem>>, vector<1x32x32xf32>
    %108 = vector.shape_cast %107 : vector<1x32x32xf32> to vector<32x32xf32>
    %cst_94 = arith.constant dense<0.000000e+00> : vector<32x256xf32>
    %109 = tpu.matmul %108, %106, %cst_94 {dimension_numbers = #tpu.dot_dimension_numbers<[1], [0], [0], [1], [0, 0, 1, 1], [], []>} : vector<32x32xf32>, vector<32x256xf32>, vector<32x256xf32> -> vector<32x256xf32>
    %110 = vector.broadcast %6 : vector<1x256xf32> to vector<32x256xf32>
    %111 = arith.mulf %109, %110 : vector<32x256xf32>
    %112 = arith.addf %105, %111 : vector<32x256xf32>
    %c0_95 = arith.constant 0 : index
    %c143_96 = arith.constant 143 : index
    %113 = vector.load %arg9[%c0_95, %c143_96] : memref<32x512xf32, #tpu.memory_space<vmem>>, vector<32x256xf32>
    %c6_97 = arith.constant 6 : index
    %c0_98 = arith.constant 0 : index
    %c0_99 = arith.constant 0 : index
    %114 = vector.load %arg5[%c6_97, %c0_98, %c0_99] : memref<9x32x32xf32, #tpu.memory_space<vmem>>, vector<1x32x32xf32>
    %115 = vector.shape_cast %114 : vector<1x32x32xf32> to vector<32x32xf32>
    %cst_100 = arith.constant dense<0.000000e+00> : vector<32x256xf32>
    %116 = tpu.matmul %115, %113, %cst_100 {dimension_numbers = #tpu.dot_dimension_numbers<[1], [0], [0], [1], [0, 0, 1, 1], [], []>} : vector<32x32xf32>, vector<32x256xf32>, vector<32x256xf32> -> vector<32x256xf32>
    %117 = vector.broadcast %5 : vector<1x256xf32> to vector<32x256xf32>
    %118 = arith.mulf %116, %117 : vector<32x256xf32>
    %119 = arith.addf %112, %118 : vector<32x256xf32>
    %c0_101 = arith.constant 0 : index
    %c144_102 = arith.constant 144 : index
    %120 = vector.load %arg9[%c0_101, %c144_102] : memref<32x512xf32, #tpu.memory_space<vmem>>, vector<32x256xf32>
    %c7_103 = arith.constant 7 : index
    %c0_104 = arith.constant 0 : index
    %c0_105 = arith.constant 0 : index
    %121 = vector.load %arg5[%c7_103, %c0_104, %c0_105] : memref<9x32x32xf32, #tpu.memory_space<vmem>>, vector<1x32x32xf32>
    %122 = vector.shape_cast %121 : vector<1x32x32xf32> to vector<32x32xf32>
    %cst_106 = arith.constant dense<0.000000e+00> : vector<32x256xf32>
    %123 = tpu.matmul %122, %120, %cst_106 {dimension_numbers = #tpu.dot_dimension_numbers<[1], [0], [0], [1], [0, 0, 1, 1], [], []>} : vector<32x32xf32>, vector<32x256xf32>, vector<32x256xf32> -> vector<32x256xf32>
    %124 = arith.addf %119, %123 : vector<32x256xf32>
    %c0_107 = arith.constant 0 : index
    %c145_108 = arith.constant 145 : index
    %125 = vector.load %arg9[%c0_107, %c145_108] : memref<32x512xf32, #tpu.memory_space<vmem>>, vector<32x256xf32>
    %c8_109 = arith.constant 8 : index
    %c0_110 = arith.constant 0 : index
    %c0_111 = arith.constant 0 : index
    %126 = vector.load %arg5[%c8_109, %c0_110, %c0_111] : memref<9x32x32xf32, #tpu.memory_space<vmem>>, vector<1x32x32xf32>
    %127 = vector.shape_cast %126 : vector<1x32x32xf32> to vector<32x32xf32>
    %cst_112 = arith.constant dense<0.000000e+00> : vector<32x256xf32>
    %128 = tpu.matmul %127, %125, %cst_112 {dimension_numbers = #tpu.dot_dimension_numbers<[1], [0], [0], [1], [0, 0, 1, 1], [], []>} : vector<32x32xf32>, vector<32x256xf32>, vector<32x256xf32> -> vector<32x256xf32>
    %129 = vector.broadcast %6 : vector<1x256xf32> to vector<32x256xf32>
    %130 = arith.mulf %128, %129 : vector<32x256xf32>
    %131 = arith.addf %124, %130 : vector<32x256xf32>
    %c0_113 = arith.constant 0 : index
    %c0_114 = arith.constant 0 : index
    %132 = vector.load %arg6[%c0_113, %c0_114] : memref<32x1xf32, #tpu.memory_space<vmem>>, vector<32x1xf32>
    %133 = vector.broadcast %132 : vector<32x1xf32> to vector<32x256xf32>
    %134 = arith.addf %131, %133 : vector<32x256xf32>
    %135 = arith.addf %8, %134 : vector<32x256xf32>
    %cst_115 = arith.constant 0.000000e+00 : f32
    %136 = vector.broadcast %cst_115 : f32 to vector<32x256xf32>
    %137 = arith.maximumf %135, %136 : vector<32x256xf32>
    %c0_116 = arith.constant 0 : index
    %c0_117 = arith.constant 0 : index
    %c0_118 = arith.constant 0 : index
    %138 = vector.load %arg7[%c0_116, %c0_117, %c0_118] : memref<1x32x256xf32, #tpu.memory_space<vmem>>, vector<1x32x256xf32>
    %139 = vector.shape_cast %138 : vector<1x32x256xf32> to vector<32x256xf32>
    %140 = vector.shape_cast %137 : vector<32x256xf32> to vector<1x32x256xf32>
    tpu.vector_store %arg7[%c0_116, %c0_117, %c0_118], %140 {strides = array<i32>} : memref<1x32x256xf32, #tpu.memory_space<vmem>>, vector<1x32x256xf32>,
    return
  }
  func.func @transform_0(%arg0: i32) -> (i32, i32, i32) {
    %c0_i32 = arith.constant 0 : i32
    %c0_i32_0 = arith.constant 0 : i32
    %c0_i32_1 = arith.constant 0 : i32
    return %arg0, %c0_i32, %c0_i32_0 : i32, i32, i32
  }
  func.func @transform_1(%arg0: i32) -> (i32, i32) {
    %c0_i32 = arith.constant 0 : i32
    %c0_i32_0 = arith.constant 0 : i32
    %c0_i32_1 = arith.constant 0 : i32
    return %c0_i32, %c0_i32_0 : i32, i32
  }
  func.func @transform_2(%arg0: i32) -> (i32, i32, i32) {
    %c0_i32 = arith.constant 0 : i32
    %c0_i32_0 = arith.constant 0 : i32
    %c0_i32_1 = arith.constant 0 : i32
    %c0_i32_2 = arith.constant 0 : i32
    return %c0_i32, %c0_i32_0, %c0_i32_1 : i32, i32, i32
  }
  func.func @transform_3(%arg0: i32) -> (i32, i32) {
    %c0_i32 = arith.constant 0 : i32
    %c0_i32_0 = arith.constant 0 : i32
    %c0_i32_1 = arith.constant 0 : i32
    return %c0_i32, %c0_i32_0 : i32, i32
  }
  func.func @transform_4(%arg0: i32) -> (i32, i32, i32) {
    %c0_i32 = arith.constant 0 : i32
    %c0_i32_0 = arith.constant 0 : i32
    %c0_i32_1 = arith.constant 0 : i32
    %c0_i32_2 = arith.constant 0 : i32
    return %c0_i32, %c0_i32_0, %c0_i32_1 : i32, i32, i32
  }
  func.func @transform_5(%arg0: i32) -> (i32, i32) {
    %c0_i32 = arith.constant 0 : i32
    %c0_i32_0 = arith.constant 0 : i32
    %c0_i32_1 = arith.constant 0 : i32
    return %c0_i32, %c0_i32_0 : i32, i32
  }
  func.func @transform_6(%arg0: i32) -> (i32, i32, i32) {
    %c0_i32 = arith.constant 0 : i32
    %c0_i32_0 = arith.constant 0 : i32
    %c0_i32_1 = arith.constant 0 : i32
    return %arg0, %c0_i32, %c0_i32_0 : i32, i32, i32
  }
}

</mosaic_0001>

<bundles_post_ra>
// kernel: tpu_custom_call.1
= control target key start
LH: loop header
LB: loop body
LE: loop exit
PB: predicated region body
PF: predicated region fallthrough
CT: control target
= control target key end

     0   :  { %11 = vsyncpa [#allocation5], 0  ;;  %s5528_s0 = inlined_call_operand.hbm [shape: f32[2,32,256], index: 0, kind: input, shape index: {}]   ;;  %s5529_s1 = inlined_call_operand.vmem [shape: f32[2,256], index: 1, kind: input, shape index: {}]   ;;  %s5530_s2 = inlined_call_operand.hbm [shape: f32[9,32,32], index: 2, kind: input, shape index: {}]   ;;  %s5531_s3 = inlined_call_operand.vmem [shape: f32[32,1], index: 3, kind: input, shape index: {}]   ;;  %s5532_s4 = inlined_call_operand.hbm [shape: f32[9,32,32], index: 4, kind: input, shape index: {}]   ;;  %s5533_s5 = inlined_call_operand.vmem [shape: f32[32,1], index: 5, kind: input, shape index: {}]   ;;  %s5534_s6 = inlined_call_operand.hbm [shape: f32[2,32,256], index: 6, kind: output, shape index: {}]  }
   0x1   :  { %13 = vsyncpa [#allocation5 + $0x1], 0 }
   0x2   :  { %14 = vsyncpa [#allocation8], 0 }
   0x3   :  { %15 = vsyncpa [#allocation6], 0 }
   0x4   :  { %17 = vsyncpa [#allocation6 + $0x1], 0  ;;  %s4590_s21 = smov 0   ;;  %s4592_s22 = smov 0  }
   0x5   :  { %s4594_s23 = smov 0   ;;  %s4596_s24 = smov 0  }
   0x6 LB: > { %s4611_s25 = sadd.s32 4294967295, %s4534_s24   ;;  %s3457_s26 = sadd.s32 4294967294, %s4534_s24   ;;  %s4534_s24 = sphi %s4596_s24, %s5565_s24   ;;  %s4530_s23 = sphi %s4594_s23, %s5564_s23   ;;  %s4526_s22 = sphi %s4592_s22, %s5563_s22   ;;  %s4522_s21 = sphi %s4590_s21, %s5562_s21  }
   0x7   : > { %p43_p0 = scmp.ne.s32.totalorder %s4526_s22, %s4522_s21  ;;  %p5535_p1 = scmp.eq.s32.totalorder %s4611_s25, 0 }
   0x8   : > { %p178_p3 = scmp.eq.s32.totalorder %s3457_s26, 1  ;;  %p3458_p5 = scmp.ge.s32.totalorder %s4534_s24, 1 }
   0x9   : > { %p4620_p4 = por %p5535_p1, %p43_p0  ;;  %p185_p7 = scmp.lt.s32.totalorder %s4534_s24, 3 }
   0xa   : > { %p4625_p6 = por %p178_p3, %p43_p0  ;;  %s4536_s30 = smov [#allocation7]  }
   0xb   : > { %s5545_s27 = scalar_select %p4620_p4, 1, 0 }
   0xc   : > { %s5546_s28 = scalar_select %p4625_p6, 1, 0 }
   0xd   : > { %p4630_p8 = pnand %p3458_p5, %p185_p7  ;;  %s200_s7 = sshll.u32 %s4536_s30, 4  ;;  %s4634_s7 = int_to_ptr.vmem [resolvable:$true] %s200_s7 }
   0xe   : > { %s4537_s9 = smov [#allocation9]   ;;  %s4378_s13 = scalar_lea.hbm %s5530_s2, 4608 }
   0xf   : > { %p3818_p9 = pneg %p4630_p8  ;;  %s216_s10 = sshll.u32 %s4537_s9, 4  ;;  %s4645_s10 = int_to_ptr.vmem [resolvable:$true] %s216_s10 }
  0x10   : > { %p4379_p12 = scmp.ne.s32.totalorder %s5530_s2, %s4378_s13  ;;  %p4385_p5 = scmp.lt.u32.totalorder %s4378_s13, %s5530_s2 }
  0x11   : > { %p4641_p11 = pnand %p3818_p9, %p5535_p1 }
  0x13   : > { %p4380_p13 = pneg %p4641_p11 }
  0x15   : > { %p4381_p0 = pnand %p4380_p13, %p4379_p12 }
  0x17   : > { %p4382_p3 = pneg %p4381_p0 }
  0x19   : > { %p4387_p7 = pnand %p4385_p5, %p4382_p3 }
  0x1b   : > { %4390 = shalt.err (!%p4387_p7)
}
  0x1c   : > { %s4391_s18 = scalar_lea.vmem %s4634_s7, 4608  ;;  %p4399_p2 = scmp.lt.s32.totalorder %s4634_s7, %s4634_s7 }
  0x1d   : > { %p4392_p9 = scmp.ne.s32.totalorder %s4634_s7, %s4391_s18  ;;  %p4400_p12 = scmp.lt.s32.totalorder %s4391_s18, %s4391_s18 }
  0x1f   : > { %p4394_p10 = pnand %p4392_p9, %p4380_p13  ;;  %p4401_p0 = por %p4400_p12, %p4399_p2 }
  0x21   : > { %p4395_p1 = pneg %p4394_p10 }
  0x23   : > { %p4402_p6 = pnand %p4401_p0, %p4395_p1 }
  0x25   : > { %4405 = shalt.err (!%p4402_p6)
}
  0x26   : > { %s4538_s19 = smov 128   ;;  %s4539_s20 = smov 8  }
  0x27   : > { %3821 = dma.hbm_to_vmem [thread:$0]  (!%p4641_p11), %s5530_s2, 4608, %s4634_s7, [#allocation8], %s4538_s19, %s4538_s19, %s4539_s20  }
  0x28   : > { %s4406_s12 = scalar_lea.hbm %s5532_s4, 4608 }
  0x29   : > { %p4407_p2 = scmp.ne.s32.totalorder %s5532_s4, %s4406_s12  ;;  %p4413_p10 = scmp.lt.u32.totalorder %s4406_s12, %s5532_s4 }
  0x2b   : > { %p4409_p1 = pnand %p4407_p2, %p4380_p13 }
  0x2d   : > { %p4410_p6 = pneg %p4409_p1 }
  0x2f   : > { %p4415_p3 = pnand %p4413_p10, %p4410_p6 }
  0x31   : > { %4418 = shalt.err (!%p4415_p3)
}
  0x32   : > { %s4419_s7 = scalar_lea.vmem %s4645_s10, 4608  ;;  %p4427_p12 = scmp.lt.s32.totalorder %s4645_s10, %s4645_s10 }
  0x33   : > { %p4420_p5 = scmp.ne.s32.totalorder %s4645_s10, %s4419_s7  ;;  %p4428_p0 = scmp.lt.s32.totalorder %s4419_s7, %s4419_s7 }
  0x35   : > { %p4422_p7 = pnand %p4420_p5, %p4380_p13  ;;  %p4429_p2 = por %p4428_p0, %p4427_p12 }
  0x37   : > { %p4423_p9 = pneg %p4422_p7 }
  0x39   : > { %p4430_p1 = pnand %p4429_p2, %p4423_p9 }
  0x3b   : > { %4433 = shalt.err (!%p4430_p1)
}
  0x3c   : > { %3824 = dma.hbm_to_vmem [thread:$0]  (!%p4641_p11), %s5532_s4, 4608, %s4645_s10, [#allocation8], %s4538_s19, %s4538_s19, %s4539_s20  }
  0x3d   : > { %s4700_s26 = sadd.s32 1, %s4534_s24   ;;  %s30_s8 = sadd.s32 1, %s4530_s23 }
  0x3e   : > { %s27_s30 = ssub.s32 %s4534_s24, %s4700_s26  ;;  %p37_p13 = scmp.ne.s32.totalorder %s4530_s23, %s4526_s22 }
  0x3f   : > { %p28_p6 = scmp.eq.s32.totalorder %s27_s30, 0  ;;  %p38_p10 = scmp.eq.s32.totalorder %s4534_s24, 0 }
  0x40   : > { %p5549_p3 = scmp.eq.s32.totalorder %s4611_s25, 1  ;;  %p3835_p7 = scmp.lt.s32.totalorder %s4534_s24, 2 }
  0x41   : > { %s4716_s11 = scalar_select %p28_p6, %s4530_s23, %s30_s8  }
  0x42   : > { %p4710_p5 = por %p5549_p3, %p37_p13  ;;  %p39_p9 = por %p38_p10, %p37_p13 }
  0x43   : > { %s233_s12 = sand.u32 1, %s4530_s23   ;;  %s3548_s10 = sshll.u32 %s4534_s24, 10 }
  0x44   : > { %s5550_s9 = scalar_select %p4710_p5, 1, 0 }
  0x45   : > { %s3462_s13 = sshll.u32 %s233_s12, 6  ;;  %s4723_s14 = scalar_lea.hbm %s5528_s0, %s3548_s10 }
  0x46   : > { %s237_s15 = scalar_lea.vmem [#allocation4], %s3462_s13  ;;  %p4727_p11 = pnand %p3835_p7, %p39_p9 }
  0x47   : > { %s244_s16 = sshll.u32 %s237_s15, 4  ;;  %s4731_s17 = scalar_lea.sflag [#allocation5], %s233_s12  ;;  %s4725_s16 = int_to_ptr.vmem [resolvable:$true] %s244_s16 }
  0x48   : > { %s4434_s18 = scalar_lea.hbm %s4723_s14, 1024  ;;  %p4436_p0 = pneg %p4727_p11 }
  0x49   : > { %p4435_p12 = scmp.ne.s32.totalorder %s4723_s14, %s4434_s18  ;;  %s4439_s13 = scalar_lea.hbm %s5528_s0, 2048 }
  0x4a   : > { %p4440_p13 = scmp.lt.u32.totalorder %s4723_s14, %s5528_s0  ;;  %p4441_p6 = scmp.lt.u32.totalorder %s4439_s13, %s4434_s18 }
  0x4b   : > { %p4437_p2 = pnand %p4436_p0, %p4435_p12  ;;  %p4443_p3 = scmp.lt.u32.totalorder %s4434_s18, %s4723_s14 }
  0x4c   : > { %p4442_p10 = por %p4441_p6, %p4440_p13 }
  0x4d   : > { %p4438_p1 = pneg %p4437_p2 }
  0x4e   : > { %p4444_p7 = por %p4443_p3, %p4442_p10 }
  0x50   : > { %p4445_p9 = pnand %p4444_p7, %p4438_p1 }
  0x52   : > { %4448 = shalt.err (!%p4445_p9)
}
  0x53   : > { %s4449_s12 = scalar_lea.vmem %s4725_s16, 1024  ;;  %s4540_s20 = smov [#allocation4]  }
  0x54   : > { %p4450_p12 = scmp.ne.s32.totalorder %s4725_s16, %s4449_s12  ;;  %s4454_s15 = sshll.u32 %s4540_s20, 4  ;;  %s4455_s15 = int_to_ptr.vmem [resolvable:$false] %s4454_s15 }
  0x55   : > { %s4456_s8 = scalar_lea.vmem %s4455_s15, 2048  ;;  %p4457_p4 = scmp.lt.s32.totalorder %s4725_s16, %s4455_s15 }
  0x56   : > { %p4452_p2 = pnand %p4450_p12, %p4436_p0  ;;  %p4458_p13 = scmp.lt.s32.totalorder %s4456_s8, %s4449_s12 }
  0x58   : > { %p4453_p5 = pneg %p4452_p2  ;;  %p4459_p6 = por %p4458_p13, %p4457_p4 }
  0x5a   : > { %p4460_p10 = pnand %p4459_p6, %p4453_p5 }
  0x5c   : > { %4463 = shalt.err (!%p4460_p10)
}
  0x5d   : > { %s4541_s18 = smov 256   ;;  %s4542_s30 = smov 16  }
  0x5e   : > { %3828 = dma.hbm_to_vmem [thread:$0]  (!%p4727_p11), %s4723_s14, 1024, %s4725_s16, %s4731_s17, %s4541_s18, %s4541_s18, %s4542_s30  }
  0x5f   : > { %256 = sbr.rel (%p4630_p8) target bundleno = 1008 (0x3f0), region = 44  ;;  %s4762_s13 = sand.u32 (!%p4630_p8), 1, %s4526_s22  }
  0x60   : > { %s5538_s10 = sshll.u32 (!%p4630_p8), %s4762_s13, 6  ;;  %s259_s19 = scalar_lea.sflag (!%p4630_p8), [#allocation5], %s4762_s13 }
  0x61   : > { %s4768_s12 = scalar_lea.vmem (!%p4630_p8), [#allocation4], %s5538_s10  ;;  %p5552_p4 = scmp.ne.s32.totalorder (!%p4630_p8), %s5545_s27, 0 }
  0x66   : > { %4509 = dma.done.wait (%p5552_p4), %s259_s19, 1024  }
  0x67   : > { %4511 = vsyncadd (%p5552_p4), %s259_s19, 4294966272  ;;  %p5553_p5 = scmp.eq.s32.totalorder %s4611_s25, 0 }
  0x69   : > { %4513 = dma.done.wait (%p5553_p5), [#allocation8], 9216   ;;  %p5554_p8 = pmov %p5553_p5 }
  0x6a   : > { %v4543_v0 = vmov 0.0   ;;  %s4544_s27 = smov 17   ;;  %v4785_v1 = vld [vmem:[%s4768_s12] sm:$0xff]  ;;  %v4788_v2 = vld [vmem:[%s4768_s12 + $0x8] sm:$0xff]  ;;  %v4799_v6 = vld [vmem:[%s4768_s12 + $0x10] sm:$0xff]  ;;  %s4545_s29 = smov 16  }
  0x6b   : > { %4515 = vsyncadd (%p5554_p8), [#allocation8], 4294958080  ;;  %480 = vmatprep.mubr.f32.mxu0 %v4543_v0  ;;  %654 = vmatprep.mubr.f32.mxu1 %v4543_v0  ;;  %v4791_v3 = vld [vmem:[%s4768_s12 + $0x20] sm:$0xff]  ;;  %v3898_v4 = vpack.i.bf16 %v4788_v2, %v4785_v1  ;;  %v4796_v5 = vld [vmem:[%s4768_s12 + $0x28] sm:$0xff]  ;;  %s4546_s14 = smov 15   ;;  %s4547_s16 = smov 1   ;;  %v4003_v14 = vpack.i.bf16 %v4799_v6, %v4785_v1  ;;  %v3988_v15 = vpack.i.bf16 %v4543_v0, %v4788_v2 }
  0x6c   : > { %3889 = vrot.lane.b32.xlu1 %v4543_v0, %s4544_s27  ;;  %v4802_v7 = vld [vmem:[%s4768_s12 + $0x18] sm:$0xff]  ;;  %v3908_v8 = vpack.i.bf16 %v4796_v5, %v4791_v3  ;;  %v4811_v10 = vld [vmem:[%s4768_s12 + $0x30] sm:$0xff]  ;;  %s5543_s7 = smov 127   ;;  %v4018_v18 = vpack.i.bf16 %v4543_v0, %v4796_v5  ;;  %s5539_s17 = smov 113   ;;  %v1806_v19 = vld [vmem:[%s5531_s3] sm:$0xff]  ;;  %v4552_v21 = vmov 0  }
  0x6d   : > { %3899 = vrot.lane.b32.xlu0 %v3898_v4, %s4544_s27  ;;  %v3903_v9 = vpack.i.bf16 %v4802_v7, %v4799_v6  ;;  %v4814_v11 = vld [vmem:[%s4768_s12 + $0x38] sm:$0xff]  ;;  %v3993_v13 = vpack.i.bf16 %v4543_v0, %v4802_v7  ;;  %v4033_v17 = vpack.i.bf16 %v4811_v10, %v4791_v3  ;;  %s4550_s20 = smov 112   ;;  %s5541_s15 = smov 111   ;;  %v1807_v20 = vld [vmem:[%s5531_s3 + $0x8] sm:$0xff]  ;;  %4129 = vset.pattern.permute.xlu1 %v4552_v21  ;;  %v1808_v22 = vld [vmem:[%s5531_s3 + $0x10] sm:$0xff]  ;;  %vm386_vm0 = vcmask 138240  }
  0x6e   : > { %v3913_v12 = vpack.i.bf16 %v4814_v11, %v4811_v10  ;;  %v4023_v16 = vpack.i.bf16 %v4543_v0, %v4814_v11  ;;  %4128 = vset.pattern.permute.xlu0 %v4552_v21  ;;  %v1809_v23 = vld [vmem:[%s5531_s3 + $0x18] sm:$0xff]  ;;  %vm561_vm1 = vcmask 130048   ;;  %vm716_vm2 = vcmask 121856   ;;  %s5555_s8 = smov 127   ;;  %p5559_p0 = scmp.ne.s32.totalorder %s5550_s9, 0 }
  0x6f   : > { %vm403_vm3 = vcmask 261120   ;;  %vm890_vm4 = vcmask 7168   ;;  %vm1191_vm5 = vcmask 1039360   ;;  %vm1354_vm6 = vcmask 924672  }
  0x70   : > { %3894 = vrot.lane.b32.xlu1 %v4543_v0, %s4544_s27  ;;  %vm1517_vm7 = vcmask 916480   ;;  %vm1672_vm8 = vcmask 908288  }
  0x71   : > { %3904 = vrot.lane.b32.xlu0 %v3903_v9, %s4544_s27 }
  0x74   : > { %3909 = vrot.lane.b32.xlu1 %v3908_v8, %s4544_s27 }
  0x75   : > { %3914 = vrot.lane.b32.xlu0 %v3913_v12, %s4544_s27 }
  0x78   : > { %3924 = vrot.lane.b32.xlu1 %v3903_v9, %s4545_s29 }
  0x79   : > { %3919 = vrot.lane.b32.xlu0 %v3898_v4, %s4545_s29 }
  0x7c   : > { %3934 = vrot.lane.b32.xlu1 %v3903_v9, %s4546_s14 }
  0x7d   : > { %3929 = vrot.lane.b32.xlu0 %v3898_v4, %s4546_s14 }
  0x80   : > { %3944 = vrot.lane.b32.xlu1 %v4543_v0, %s4546_s14 }
  0x81   : > { %3939 = vrot.lane.b32.xlu0 %v4543_v0, %s4545_s29 }
  0x84   : > { %3954 = vrot.lane.b32.xlu1 %v3913_v12, %s4545_s29 }
  0x85   : > { %3949 = vrot.lane.b32.xlu0 %v3908_v8, %s4545_s29 }
  0x88   : > { %3964 = vrot.lane.b32.xlu1 %v3913_v12, %s4546_s14 }
  0x89   : > { %3959 = vrot.lane.b32.xlu0 %v3908_v8, %s4546_s14 }
  0x8c   : > { %3974 = vrot.lane.b32.xlu1 %v4543_v0, %s4546_s14 }
  0x8d   : > { %3969 = vrot.lane.b32.xlu0 %v4543_v0, %s4545_s29 }
  0x90   : > { %3984 = vrot.lane.b32.xlu1 %v3903_v9, %s4547_s16 }
  0x91   : > { %3979 = vrot.lane.b32.xlu0 %v3898_v4, %s4547_s16 }
  0x94   : > { %3994 = vrot.lane.b32.xlu1 %v3993_v13, %s5543_s7 }
  0x95   : > { %3989 = vrot.lane.b32.xlu0 %v3988_v15, %s5543_s7 }
  0x98   : > { %4004 = vrot.lane.b32.xlu1 %v4003_v14, %s5543_s7 }
  0x99   : > { %3999 = vrot.lane.b32.xlu0 %v4543_v0, %s4547_s16 }
  0x9c   : > { %4014 = vrot.lane.b32.xlu1 %v3913_v12, %s4547_s16 }
  0x9d   : > { %4009 = vrot.lane.b32.xlu0 %v3908_v8, %s4547_s16 }
  0xa0   : > { %4024 = vrot.lane.b32.xlu1 %v4023_v16, %s5543_s7 }
  0xa1   : > { %4019 = vrot.lane.b32.xlu0 %v4018_v18, %s5543_s7 }
  0xa4   : > { %4034 = vrot.lane.b32.xlu1 %v4033_v17, %s5543_s7 }
  0xa5   : > { %4029 = vrot.lane.b32.xlu0 %v4543_v0, %s4547_s16 }
  0xa8   : > { %4044 = vrot.lane.b32.xlu1 %v3993_v13, %s5539_s17 }
  0xa9   : > { %4039 = vrot.lane.b32.xlu0 %v3988_v15, %s5539_s17 }
  0xac   : > { %4054 = vrot.lane.b32.xlu1 %v4018_v18, %s5539_s17 }
  0xad   : > { %4049 = vrot.lane.b32.xlu0 %v4003_v14, %s5539_s17 }
  0xb0   : > { %4064 = vrot.lane.b32.xlu1 %v4033_v17, %s5539_s17 }
  0xb1   : > { %4059 = vrot.lane.b32.xlu0 %v4023_v16, %s5539_s17 }
  0xb4   : > { %4074 = vrot.lane.b32.xlu1 %v3993_v13, %s4550_s20 }
  0xb5   : > { %4069 = vrot.lane.b32.xlu0 %v3988_v15, %s4550_s20 }
  0xb8   : > { %4084 = vrot.lane.b32.xlu1 %v3993_v13, %s5541_s15  ;;  %v346_v13 = vld [vmem:[#allocation7] sm:$0xff] }
  0xb9   : > { %4079 = vrot.lane.b32.xlu0 %v3988_v15, %s5541_s15 }
  0xbc   : > { %4094 = vrot.lane.b32.xlu1 %v4003_v14, %s5541_s15 }
  0xbd   : > { %4089 = vrot.lane.b32.xlu0 %v4003_v14, %s4550_s20 }
  0xc0   : > { %4104 = vrot.lane.b32.xlu1 %v4023_v16, %s4550_s20 }
  0xc1   : > { %4099 = vrot.lane.b32.xlu0 %v4018_v18, %s4550_s20 }
  0xc4   : > { %4114 = vrot.lane.b32.xlu1 %v4023_v16, %s5541_s15 }
  0xc5   : > { %4109 = vrot.lane.b32.xlu0 %v4018_v18, %s5541_s15 }
  0xc8   : > { %4124 = vrot.lane.b32.xlu1 %v4033_v17, %s5541_s15 }
  0xc9   : > { %4119 = vrot.lane.b32.xlu0 %v4033_v17, %s4550_s20 }
  0xcc   : > { %1817 = vperm.xlu1 %4129, %v1807_v20  }
  0xcd   : > { %1812 = vperm.xlu0 %4128, %v1806_v19  }
  0xd0   : > { %1822 = vperm.xlu1 %4129, %v1808_v22  }
  0xd1   : > { %1827 = vperm.xlu0 %4128, %v1809_v23   ;;  %v347_v23 = vld [vmem:[#allocation7 + $0x8] sm:$0xff] }
  0xd4   : > { %4131 = vrot.lane.b32.xlu1 %v4543_v0, %s4544_s27 }
  0xd5   : > { %4136 = vrot.lane.b32.xlu0 %v4543_v0, %s4544_s27 }
  0xd8   : > { %4141 = vrot.lane.b32.xlu1 %v4543_v0, %s4545_s29 }
  0xd9   : > { %4146 = vrot.lane.b32.xlu0 %v4543_v0, %s4546_s14 }
  0xde   : > { %v3890_v24 = vpop.permute.xlu1 %3889 }
  0xdf   : > { %v3900_v26 = vpop.permute.xlu0 %3899  ;;  %v3891_v28 = vunpack.i.l.bf16 %v3890_v24  ;;  %v3892_v32 = vunpack.i.h.bf16 %v3890_v24 }
  0xe0   : > { %v3902_v29 = vunpack.i.h.bf16 %v3900_v26  ;;  %v3901_v30 = vunpack.i.l.bf16 %v3900_v26 }
  0xe2   : > { %v3895_v25 = vpop.permute.xlu1 %3894  ;;  %v388_v39 = vsel %vm386_vm0, %v3901_v30, %v3902_v29  ;;  %v387_v41 = vsel %vm386_vm0, %v3891_v28, %v3901_v30 }
  0xe3   : > { %v3905_v31 = vpop.permute.xlu0 %3904  ;;  %v3896_v37 = vunpack.i.l.bf16 %v3895_v25  ;;  %v3897_v48 = vunpack.i.h.bf16 %v3895_v25 }
  0xe4   : > { %v3907_v34 = vunpack.i.h.bf16 %v3905_v31  ;;  %v3906_v35 = vunpack.i.l.bf16 %v3905_v31 }
  0xe6   : > { %v3910_v27 = vpop.permute.xlu1 %3909  ;;  %v390_v40 = vsel %vm386_vm0, %v3906_v35, %v3907_v34  ;;  %v389_v42 = vsel %vm386_vm0, %v3892_v32, %v3906_v35  ;;  %v348_v34 = vld [vmem:[#allocation7 + $0x10] sm:$0xff] }
  0xe7   : > { %v3912_v33 = vunpack.i.h.bf16 %v3910_v27  ;;  %v3911_v38 = vunpack.i.l.bf16 %v3910_v27  ;;  %v3915_v45 = vpop.permute.xlu0 %3914  ;;  %v3550_v46 = vpack.c.bf16 %v390_v40, %v388_v39  ;;  %v3552_v47 = vpack.c.bf16 %v389_v42, %v387_v41 }
  0xe8   : > { %v3917_v49 = vunpack.i.h.bf16 %v3915_v45  ;;  %v3916_v50 = vunpack.i.l.bf16 %v3915_v45 }
  0xe9   : > { %v392_v52 = vsel %vm386_vm0, %v3911_v38, %v3912_v33  ;;  %3551 = vmatprep.subr.bf16.mxu0 %v3550_v46  ;;  %v391_v54 = vsel %vm386_vm0, %v3896_v37, %v3911_v38 }
  0xea   : > { %v4892_v36 = vpop.permute.xlu1 %3924  ;;  %3553 = vmatpush1.bf16.msra.mxu0 %v3552_v47  ;;  %v394_v53 = vsel %vm386_vm0, %v3916_v50, %v3917_v49  ;;  %v393_v55 = vsel %vm386_vm0, %v3897_v48, %v3916_v50 }
  0xeb   : > { %v3927_v43 = vunpack.i.h.bf16 %v4892_v36  ;;  %v3926_v44 = vunpack.i.l.bf16 %v4892_v36  ;;  %v3920_v56 = vpop.permute.xlu0 %3919  ;;  %v3554_v57 = vpack.c.bf16 %v394_v53, %v392_v52  ;;  %v3556_v58 = vpack.c.bf16 %v393_v55, %v391_v54 }
  0xec   : > { %v3922_v62 = vunpack.i.h.bf16 %v3920_v56  ;;  %v3921_v63 = vunpack.i.l.bf16 %v3920_v56 }
  0xed   : > { %v565_v59 = vsel %vm561_vm1, %v3926_v44, %v3927_v43  ;;  %3555 = vmatprep.subr.bf16.mxu0 %v3554_v57 }
  0xee   : > { %v3935_v51 = vpop.permute.xlu1 %3934  ;;  %3557 = vmatpush1.bf16.msra.mxu0 %v3556_v58  ;;  %v563_v12 = vsel %vm561_vm1, %v3921_v63, %v3922_v62 }
  0xef   : > { %v3937_v60 = vunpack.i.h.bf16 %v3935_v51  ;;  %v3936_v61 = vunpack.i.l.bf16 %v3935_v51  ;;  %v3930_v14 = vpop.permute.xlu0 %3929  ;;  %v3558_v15 = vpack.c.bf16 %v565_v59, %v563_v12 }
  0xf0   : > { %v3932_v17 = vunpack.i.h.bf16 %v3930_v14  ;;  %v3931_v18 = vunpack.i.l.bf16 %v3930_v14 }
  0xf1   : > { %v720_v20 = vsel %vm716_vm2, %v3936_v61, %v3937_v60  ;;  %3559 = vmatprep.subr.bf16.mxu1 %v3558_v15  ;;  %3471 = vmatmul.mubr.msk.f32.vlgmr.msra.gmra.mrb[0].mxu0 %vm403_vm3, %v346_v13 }
  0xf2   : > { %v3945_v4 = vpop.permute.xlu1 %3944  ;;  %v718_v22 = vsel %vm716_vm2, %v3931_v18, %v3932_v17  ;;  %486 = vmatprep.mubr.f32.mxu0 %v4543_v0 }
  0xf3   : > { %v3947_v8 = vunpack.i.h.bf16 %v3945_v4  ;;  %v3946_v9 = vunpack.i.l.bf16 %v3945_v4  ;;  %v3940_v27 = vpop.permute.xlu0 %3939  ;;  %v3566_v28 = vpack.c.bf16 %v720_v20, %v718_v22 }
  0xf4   : > { %v3942_v29 = vunpack.i.h.bf16 %v3940_v27  ;;  %v3941_v30 = vunpack.i.l.bf16 %v3940_v27 }
  0xf5   : > { %v719_v16 = vsel %vm716_vm2, %v3947_v8, %v3936_v61  ;;  %v717_v21 = vsel %vm716_vm2, %v3946_v9, %v3931_v18  ;;  %3567 = vmatprep.subr.bf16.mxu0 %v3566_v28  ;;  %3472 = vmatmul.mubr.msk.f32.gmra.mrb[2].mxu0 %vm403_vm3, %v347_v23  ;;  %v688_v9 = vld [vmem:[#allocation7 + $0x40] sm:$0xff]  ;;  %v689_v23 = vld [vmem:[#allocation7 + $0x48] sm:$0xff] }
  0xf6   : > { %v4907_v19 = vpop.permute.xlu1 %3954  ;;  %v3568_v24 = vpack.c.bf16 %v719_v16, %v717_v21  ;;  %v562_v32 = vsel %vm561_vm1, %v3941_v30, %v3921_v63  ;;  %v564_v33 = vsel %vm561_vm1, %v3942_v29, %v3926_v44  ;;  %492 = vmatprep.mubr.f32.mxu0 %v4543_v0  ;;  %v349_v44 = vld [vmem:[#allocation7 + $0x18] sm:$0xff]  ;;  %v533_v21 = vld [vmem:[#allocation7 + $0x20] sm:$0xff] }
  0xf7   : > { %v3957_v25 = vunpack.i.h.bf16 %v4907_v19  ;;  %v3956_v26 = vunpack.i.l.bf16 %v4907_v19  ;;  %v3950_v35 = vpop.permute.xlu0 %3949  ;;  %v3560_v36 = vpack.c.bf16 %v564_v33, %v562_v32  ;;  %v534_v32 = vld [vmem:[#allocation7 + $0x28] sm:$0xff] }
  0xf8   : > { %3569 = vmatpush1.bf16.msra.mxu0 %v3568_v24  ;;  %v3952_v40 = vunpack.i.h.bf16 %v3950_v35  ;;  %v3951_v41 = vunpack.i.l.bf16 %v3950_v35 }
  0xf9   : > { %v569_v37 = vsel %vm561_vm1, %v3956_v26, %v3957_v25  ;;  %3561 = vmatpush1.bf16.msra.mxu1 %v3560_v36  ;;  %3473 = vmatmul.mubr.msk.f32.gmra.mrb[4].mxu0 %vm403_vm3, %v348_v34  ;;  %v690_v34 = vld [vmem:[#allocation7 + $0x50] sm:$0xff] }
  0xfa   : > { %v3965_v31 = vpop.permute.xlu1 %3964  ;;  %v567_v46 = vsel %vm561_vm1, %v3951_v41, %v3952_v40  ;;  %498 = vmatprep.mubr.f32.mxu0 %v4543_v0 }
  0xfb   : > { %v3967_v38 = vunpack.i.h.bf16 %v3965_v31  ;;  %v3966_v39 = vunpack.i.l.bf16 %v3965_v31  ;;  %v3960_v47 = vpop.permute.xlu0 %3959  ;;  %v3562_v48 = vpack.c.bf16 %v569_v37, %v567_v46 }
  0xfc   : > { %v3962_v50 = vunpack.i.h.bf16 %v3960_v47  ;;  %v3961_v51 = vunpack.i.l.bf16 %v3960_v47  ;;  %v691_v47 = vld [vmem:[#allocation7 + $0x58] sm:$0xff] }
  0xfd   : > { %v724_v53 = vsel %vm716_vm2, %v3966_v39, %v3967_v38  ;;  %3563 = vmatprep.subr.bf16.mxu1 %v3562_v48  ;;  %3474 = vmatmul.mubr.msk.f32.gmra.mrb[6].mxu0 %vm403_vm3, %v349_v44 }
  0xfe   : > { %v3975_v42 = vpop.permute.xlu1 %3974  ;;  %v722_v55 = vsel %vm716_vm2, %v3961_v51, %v3962_v50  ;;  %809 = vmatprep.mubr.f32.mxu0 %v4543_v0 }
  0xff   : > { %v3977_v43 = vunpack.i.h.bf16 %v3975_v42  ;;  %v3976_v45 = vunpack.i.l.bf16 %v3975_v42  ;;  %v3970_v59 = vpop.permute.xlu0 %3969  ;;  %v3570_v60 = vpack.c.bf16 %v724_v53, %v722_v55 }
 0x100   : > { %v3972_v61 = vunpack.i.h.bf16 %v3970_v59  ;;  %v3971_v62 = vunpack.i.l.bf16 %v3970_v59 }
 0x101   : > { %v723_v49 = vsel %vm716_vm2, %v3977_v43, %v3966_v39  ;;  %v721_v54 = vsel %vm716_vm2, %v3976_v45, %v3961_v51  ;;  %3571 = vmatprep.subr.bf16.mxu0 %v3570_v60  ;;  %v535_v45 = vld [vmem:[#allocation7 + $0x30] sm:$0xff] }
 0x102   : > { %v4925_v52 = vpop.permute.xlu1 %3984  ;;  %v3572_v56 = vpack.c.bf16 %v723_v49, %v721_v54  ;;  %v566_v4 = vsel %vm561_vm1, %v3971_v62, %v3951_v41  ;;  %v568_v8 = vsel %vm561_vm1, %v3972_v61, %v3956_v26 }
 0x103   : > { %v3987_v57 = vunpack.i.h.bf16 %v4925_v52  ;;  %v3986_v58 = vunpack.i.l.bf16 %v4925_v52  ;;  %v3980_v12 = vpop.permute.xlu0 %3979  ;;  %v3564_v13 = vpack.c.bf16 %v568_v8, %v566_v4 }
 0x104   : > { %3573 = vmatpush1.bf16.msra.mxu0 %v3572_v56  ;;  %v3982_v17 = vunpack.i.h.bf16 %v3980_v12  ;;  %v3981_v18 = vunpack.i.l.bf16 %v3980_v12 }
 0x105   : > { %v894_v14 = vsel %vm890_vm4, %v3986_v58, %v3987_v57  ;;  %3565 = vmatpush1.bf16.msra.mxu1 %v3564_v13  ;;  %v536_v57 = vld [vmem:[#allocation7 + $0x38] sm:$0xff] }
 0x106   : > { %v3995_v63 = vpop.permute.xlu1 %3994  ;;  %v892_v24 = vsel %vm890_vm4, %v3981_v18, %v3982_v17 }
 0x107   : > { %v3997_v15 = vunpack.i.h.bf16 %v3995_v63  ;;  %v3996_v16 = vunpack.i.l.bf16 %v3995_v63  ;;  %3479 = vmatmul.mubr.msk.f32.vlgmr.msra.gmra.mrb[8].mxu0 %vm403_vm3, %v688_v9  ;;  %v3990_v25 = vpop.permute.xlu0 %3989  ;;  %v3574_v26 = vpack.c.bf16 %v894_v14, %v892_v24  ;;  %v1151_v24 = vld [vmem:[#allocation7 + $0xa0] sm:$0xff] }
 0x108   : > { %815 = vmatprep.mubr.f32.mxu0 %v4543_v0  ;;  %v3992_v28 = vunpack.i.h.bf16 %v3990_v25  ;;  %v3991_v29 = vunpack.i.l.bf16 %v3990_v25  ;;  %3475 = vmatmul.mubr.msk.f32.vlgmr.msra.gmra.mrb[0].mxu1 %vm403_vm3, %v533_v21  ;;  %v3582_v25 = vpack.c.bf16 %v4802_v7, %v4788_v2  ;;  %v3584_v2 = vpack.c.bf16 %v4799_v6, %v4785_v1  ;;  %v1153_v6 = vld [vmem:[#allocation7 + $0xb0] sm:$0xff] }
 0x109   : > { %v1195_v31 = vsel %vm1191_vm5, %v3996_v16, %v3997_v15  ;;  %3575 = vmatprep.subr.bf16.mxu1 %v3574_v26  ;;  %660 = vmatprep.mubr.f32.mxu1 %v4543_v0 }
 0x10a   : > { %v4005_v19 = vpop.permute.xlu1 %4004  ;;  %v1193_v35 = vsel %vm1191_vm5, %v3991_v29, %v3992_v28 }
 0x10b   : > { %v4007_v20 = vunpack.i.h.bf16 %v4005_v19  ;;  %v4006_v22 = vunpack.i.l.bf16 %v4005_v19  ;;  %3480 = vmatmul.mubr.msk.f32.gmra.mrb[10].mxu0 %vm403_vm3, %v689_v23  ;;  %v4000_v39 = vpop.permute.xlu0 %3999  ;;  %v3590_v40 = vpack.c.bf16 %v1195_v31, %v1193_v35 }
 0x10c   : > { %821 = vmatprep.mubr.f32.mxu0 %v4543_v0  ;;  %v4002_v41 = vunpack.i.h.bf16 %v4000_v39  ;;  %v4001_v42 = vunpack.i.l.bf16 %v4000_v39  ;;  %3476 = vmatmul.mubr.msk.f32.gmra.mrb[2].mxu1 %vm403_vm3, %v534_v32  ;;  %v862_v32 = vld [vmem:[#allocation7 + $0x60] sm:$0xff]  ;;  %v3586_v39 = vpack.c.bf16 %v4814_v11, %v4796_v5 }
 0x10d   : > { %v1194_v27 = vsel %vm1191_vm5, %v4007_v20, %v3996_v16  ;;  %v1192_v33 = vsel %vm1191_vm5, %v4006_v22, %v3991_v29  ;;  %3591 = vmatprep.subr.bf16.mxu0 %v3590_v40  ;;  %666 = vmatprep.mubr.f32.mxu1 %v4543_v0 }
 0x10e   : > { %v4941_v30 = vpop.permute.xlu1 %4014  ;;  %v3592_v36 = vpack.c.bf16 %v1194_v27, %v1192_v33  ;;  %v893_v46 = vsel %vm890_vm4, %v4002_v41, %v3986_v58  ;;  %v891_v44 = vsel %vm890_vm4, %v4001_v42, %v3981_v18  ;;  %v1152_v33 = vld [vmem:[#allocation7 + $0xa8] sm:$0xff] }
 0x10f   : > { %v4017_v37 = vunpack.i.h.bf16 %v4941_v30  ;;  %v4016_v38 = vunpack.i.l.bf16 %v4941_v30  ;;  %3481 = vmatmul.mubr.msk.f32.gmra.mrb[12].mxu0 %vm403_vm3, %v690_v34  ;;  %v3576_v48 = vpack.c.bf16 %v893_v46, %v891_v44  ;;  %v4010_v49 = vpop.permute.xlu0 %4009  ;;  %v863_v42 = vld [vmem:[#allocation7 + $0x68] sm:$0xff] }
 0x110   : > { %3593 = vmatpush1.bf16.msra.mxu0 %v3592_v36  ;;  %827 = vmatprep.mubr.f32.mxu0 %v4543_v0  ;;  %v4012_v53 = vunpack.i.h.bf16 %v4010_v49  ;;  %v4011_v54 = vunpack.i.l.bf16 %v4010_v49 }
 0x111   : > { %v898_v50 = vsel %vm890_vm4, %v4016_v38, %v4017_v37  ;;  %3477 = vmatmul.mubr.msk.f32.gmra.mrb[4].mxu1 %vm403_vm3, %v535_v45 }
 0x112   : > { %v4025_v43 = vpop.permute.xlu1 %4024  ;;  %3577 = vmatpush1.bf16.msra.mxu1 %v3576_v48  ;;  %v896_v59 = vsel %vm890_vm4, %v4011_v54, %v4012_v53  ;;  %672 = vmatprep.mubr.f32.mxu1 %v4543_v0  ;;  %v3588_v48 = vpack.c.bf16 %v4811_v10, %v4791_v3  ;;  %v1154_v3 = vld [vmem:[#allocation7 + $0xb8] sm:$0xff] }
 0x113   : > { %v4027_v51 = vunpack.i.h.bf16 %v4025_v43  ;;  %v4026_v52 = vunpack.i.l.bf16 %v4025_v43  ;;  %3482 = vmatmul.mubr.msk.f32.gmra.mrb[14].mxu0 %vm403_vm3, %v691_v47  ;;  %v4020_v60 = vpop.permute.xlu0 %4019  ;;  %v3578_v61 = vpack.c.bf16 %v898_v50, %v896_v59 }
 0x114   : > { %1284 = vmatprep.mubr.f32.mxu0 %v4543_v0  ;;  %v4022_v63 = vunpack.i.h.bf16 %v4020_v60  ;;  %v4021_v4 = vunpack.i.l.bf16 %v4020_v60 }
 0x115   : > { %v1199_v9 = vsel %vm1191_vm5, %v4026_v52, %v4027_v51  ;;  %3478 = vmatmul.mubr.msk.f32.gmra.mrb[6].mxu1 %vm403_vm3, %v536_v57  ;;  %3579 = vmatprep.subr.bf16.mxu1 %v3578_v61 }
 0x116   : > { %v4035_v55 = vpop.permute.xlu1 %4034  ;;  %983 = vmatprep.mubr.f32.mxu1 %v4543_v0  ;;  %v1197_v13 = vsel %vm1191_vm5, %v4021_v4, %v4022_v63 }
 0x117   : > { %v4037_v56 = vunpack.i.h.bf16 %v4035_v55  ;;  %v4036_v58 = vunpack.i.l.bf16 %v4035_v55  ;;  %v4030_v15 = vpop.permute.xlu0 %4029  ;;  %v3594_v16 = vpack.c.bf16 %v1199_v9, %v1197_v13  ;;  %v865_v9 = vld [vmem:[#allocation7 + $0x78] sm:$0xff]  ;;  %v1326_v13 = vld [vmem:[#allocation7 + $0xc0] sm:$0xff] }
 0x118   : > { %v4032_v19 = vunpack.i.h.bf16 %v4030_v15  ;;  %v4031_v20 = vunpack.i.l.bf16 %v4030_v15 }
 0x119   : > { %v1198_v62 = vsel %vm1191_vm5, %v4037_v56, %v4026_v52  ;;  %v1196_v12 = vsel %vm1191_vm5, %v4036_v58, %v4021_v4  ;;  %3595 = vmatprep.subr.bf16.mxu0 %v3594_v16  ;;  %v864_v52 = vld [vmem:[#allocation7 + $0x70] sm:$0xff] }
 0x11a   : > { %v4045_v8 = vpop.permute.xlu1 %4044  ;;  %v3596_v14 = vpack.c.bf16 %v1198_v62, %v1196_v12  ;;  %v897_v22 = vsel %vm890_vm4, %v4032_v19, %v4016_v38  ;;  %v895_v23 = vsel %vm890_vm4, %v4031_v20, %v4011_v54 }
 0x11b   : > { %v4047_v17 = vunpack.i.h.bf16 %v4045_v8  ;;  %v4046_v18 = vunpack.i.l.bf16 %v4045_v8  ;;  %v3580_v26 = vpack.c.bf16 %v897_v22, %v895_v23  ;;  %v4040_v27 = vpop.permute.xlu0 %4039  ;;  %v1025_v22 = vld [vmem:[#allocation7 + $0x80] sm:$0xff] }
 0x11c   : > { %3597 = vmatpush1.bf16.msra.mxu0 %v3596_v14  ;;  %v4042_v28 = vunpack.i.h.bf16 %v4040_v27  ;;  %v4041_v29 = vunpack.i.l.bf16 %v4040_v27 }
 0x11d   : > { %v1358_v31 = vsel %vm1354_vm6, %v4046_v18, %v4047_v17  ;;  %3581 = vmatpush1.bf16.msra.mxu1 %v3580_v26 }
 0x11e   : > { %v4055_v21 = vpop.permute.xlu1 %4054  ;;  %v1356_v34 = vsel %vm1354_vm6, %v4041_v29, %v4042_v28  ;;  %3583 = vmatprep.subr.bf16.mxu1 %v3582_v25 }
 0x11f   : > { %3491 = vmatmul.mubr.msk.f32.vlgmr.msra.gmra.mrb[16].mxu0 %vm403_vm3, %v1151_v24  ;;  %v4050_v35 = vpop.permute.xlu0 %4049  ;;  %v3598_v36 = vpack.c.bf16 %v1358_v31, %v1356_v34  ;;  %v4057_v40 = vunpack.i.h.bf16 %v4055_v21  ;;  %v4056_v41 = vunpack.i.l.bf16 %v4055_v21  ;;  %v1327_v24 = vld [vmem:[#allocation7 + $0xc8] sm:$0xff] }
 0x120   : > { %1290 = vmatprep.mubr.f32.mxu0 %v4543_v0  ;;  %v4052_v7 = vunpack.i.h.bf16 %v4050_v35  ;;  %v4051_v37 = vunpack.i.l.bf16 %v4050_v35  ;;  %3483 = vmatmul.mubr.msk.f32.vlgmr.msra.gmra.mrb[8].mxu1 %vm403_vm3, %v862_v32  ;;  %v1026_v34 = vld [vmem:[#allocation7 + $0x88] sm:$0xff] }
 0x121   : > { %3599 = vmatprep.subr.bf16.mxu0 %v3598_v36  ;;  %989 = vmatprep.mubr.f32.mxu1 %v4543_v0  ;;  %v1360_v53 = vsel %vm1354_vm6, %v4056_v41, %v4057_v40 }
 0x122   : > { %v4065_v30 = vpop.permute.xlu1 %4064  ;;  %v1357_v46 = vsel %vm1354_vm6, %v4052_v7, %v4046_v18  ;;  %v1355_v1 = vsel %vm1354_vm6, %v4051_v37, %v4041_v29  ;;  %3585 = vmatpush1.bf16.msra.mxu1 %v3584_v2  ;;  %v1328_v2 = vld [vmem:[#allocation7 + $0xd0] sm:$0xff] }
 0x123   : > { %3492 = vmatmul.mubr.msk.f32.gmra.mrb[18].mxu0 %vm403_vm3, %v1152_v33  ;;  %v4067_v43 = vunpack.i.h.bf16 %v4065_v30  ;;  %v4066_v45 = vunpack.i.l.bf16 %v4065_v30  ;;  %v3600_v44 = vpack.c.bf16 %v1357_v46, %v1355_v1  ;;  %v4060_v47 = vpop.permute.xlu0 %4059  ;;  %3587 = vmatprep.subr.bf16.mxu1 %v3586_v39  ;;  %v1027_v46 = vld [vmem:[#allocation7 + $0x90] sm:$0xff] }
 0x124   : > { %1296 = vmatprep.mubr.f32.mxu0 %v4543_v0  ;;  %v4062_v49 = vunpack.i.h.bf16 %v4060_v47  ;;  %v4061_v50 = vunpack.i.l.bf16 %v4060_v47  ;;  %3484 = vmatmul.mubr.msk.f32.gmra.mrb[10].mxu1 %vm403_vm3, %v863_v42 }
 0x125   : > { %995 = vmatprep.mubr.f32.mxu1 %v4543_v0  ;;  %v1359_v54 = vsel %vm1354_vm6, %v4066_v45, %v4056_v41  ;;  %3601 = vmatpush1.bf16.msra.mxu0 %v3600_v44 }
 0x126   : > { %v4981_v38 = vpop.permute.xlu1 %4074  ;;  %v1361_v55 = vsel %vm1354_vm6, %v4067_v43, %v4061_v50  ;;  %v1362_v10 = vsel %vm1354_vm6, %v4061_v50, %v4062_v49  ;;  %3589 = vmatpush1.bf16.msra.mxu1 %v3588_v48 }
 0x127   : > { %v4077_v5 = vunpack.i.h.bf16 %v4981_v38  ;;  %v4076_v11 = vunpack.i.l.bf16 %v4981_v38  ;;  %3493 = vmatmul.mubr.msk.f32.gmra.mrb[20].mxu0 %vm403_vm3, %v1153_v6  ;;  %v3604_v56 = vpack.c.bf16 %v1361_v55, %v1359_v54  ;;  %v4070_v57 = vpop.permute.xlu0 %4069  ;;  %v3602_v58 = vpack.c.bf16 %v1362_v10, %v1360_v53  ;;  %v1329_v6 = vld [vmem:[#allocation7 + $0xd8] sm:$0xff] }
 0x128   : > { %1302 = vmatprep.mubr.f32.mxu0 %v4543_v0  ;;  %v4072_v62 = vunpack.i.h.bf16 %v4070_v57  ;;  %v4071_v63 = vunpack.i.l.bf16 %v4070_v57  ;;  %3485 = vmatmul.mubr.msk.f32.gmra.mrb[12].mxu1 %vm403_vm3, %v864_v52 }
 0x129   : > { %v1521_v59 = vsel %vm1517_vm7, %v4076_v11, %v4077_v5  ;;  %3603 = vmatprep.subr.bf16.mxu0 %v3602_v58  ;;  %1001 = vmatprep.mubr.f32.mxu1 %v4543_v0 }
 0x12a   : > { %v4085_v51 = vpop.permute.xlu1 %4084  ;;  %3605 = vmatpush1.bf16.msra.mxu0 %v3604_v56  ;;  %v1519_v14 = vsel %vm1517_vm7, %v4071_v63, %v4072_v62  ;;  %v1645_v62 = vld [vmem:[#allocation7 + $0x108] sm:$0xff] }
 0x12b   : > { %v4087_v60 = vunpack.i.h.bf16 %v4085_v51  ;;  %v4086_v61 = vunpack.i.l.bf16 %v4085_v51  ;;  %3494 = vmatmul.mubr.msk.f32.gmra.mrb[22].mxu0 %vm403_vm3, %v1154_v3  ;;  %v4080_v15 = vpop.permute.xlu0 %4079  ;;  %v3606_v16 = vpack.c.bf16 %v1521_v59, %v1519_v14  ;;  %v1028_v51 = vld [vmem:[#allocation7 + $0x98] sm:$0xff]  ;;  %v1644_v59 = vld [vmem:[#allocation7 + $0x100] sm:$0xff] }
 0x12c   : > { %1447 = vmatprep.mubr.f32.mxu0 %v4543_v0  ;;  %v4082_v18 = vunpack.i.h.bf16 %v4080_v15  ;;  %v4081_v19 = vunpack.i.l.bf16 %v4080_v15  ;;  %3486 = vmatmul.mubr.msk.f32.gmra.mrb[14].mxu1 %vm403_vm3, %v865_v9  ;;  %v1647_v9 = vld [vmem:[#allocation7 + $0x118] sm:$0xff]  ;;  %v506_v15 = vlaneseq }
 0x12d   : > { %v1676_v21 = vsel %vm1672_vm8, %v4086_v61, %v4087_v60  ;;  %3607 = vmatprep.subr.bf16.mxu1 %v3606_v16  ;;  %1105 = vmatprep.mubr.f32.mxu1 %v4543_v0 }
 0x12e   : > { %v4095_v4 = vpop.permute.xlu1 %4094  ;;  %v1674_v25 = vsel %vm1672_vm8, %v4081_v19, %v4082_v18  ;;  %v507_v18 = vshrl.u32 %v506_v15, 7 }
 0x12f   : > { %v4097_v8 = vunpack.i.h.bf16 %v4095_v4  ;;  %v4096_v12 = vunpack.i.l.bf16 %v4095_v4  ;;  %3495 = vmatmul.mubr.msk.f32.vlgmr.msra.gmra.mrb[24].mxu0 %vm403_vm3, %v1326_v13  ;;  %v4090_v29 = vpop.permute.xlu0 %4089  ;;  %v3614_v30 = vpack.c.bf16 %v1676_v21, %v1674_v25  ;;  %v1646_v4 = vld [vmem:[#allocation7 + $0x110] sm:$0xff] }
 0x130   : > { %1453 = vmatprep.mubr.f32.mxu0 %v4543_v0  ;;  %v4092_v31 = vunpack.i.h.bf16 %v4090_v29  ;;  %v4091_v32 = vunpack.i.l.bf16 %v4090_v29  ;;  %3487 = vmatmul.mubr.msk.f32.vlgmr.msra.gmra.mrb[0].mxu1 %vm403_vm3, %v1025_v22  ;;  %v508_v21 = vsub.s32 0, %v507_v18  ;;  %v315_v22 = vld [vmem:[%s5529_s1] ss:$2 sm:$0x3]  ;;  %v512_v25 = vsub.s32 1, %v507_v18 }
 0x131   : > { %v1675_v17 = vsel %vm1672_vm8, %v4097_v8, %v4086_v61  ;;  %v1673_v23 = vsel %vm1672_vm8, %v4096_v12, %v4081_v19  ;;  %3615 = vmatprep.subr.bf16.mxu0 %v3614_v30  ;;  %1111 = vmatprep.mubr.f32.mxu1 %v4543_v0  ;;  %v1489_v61 = vld [vmem:[#allocation7 + $0xe0] sm:$0xff]  ;;  %v1491_v8 = vld [vmem:[#allocation7 + $0xf0] sm:$0xff]  ;;  %v1492_v12 = vld [vmem:[#allocation7 + $0xf8] sm:$0xff] }
 0x132   : > { %v5012_v20 = vpop.permute.xlu1 %4104  ;;  %v3616_v26 = vpack.c.bf16 %v1675_v17, %v1673_v23  ;;  %v1520_v35 = vsel %vm1517_vm7, %v4092_v31, %v4076_v11  ;;  %v1518_v36 = vsel %vm1517_vm7, %v4091_v32, %v4071_v63  ;;  %v1490_v63 = vld [vmem:[#allocation7 + $0xe8] sm:$0xff]  ;;  %v5082_v29 = vrot.slane %v315_v22, %v512_v25 }
 0x133   : > { %v4107_v27 = vunpack.i.h.bf16 %v5012_v20  ;;  %v4106_v28 = vunpack.i.l.bf16 %v5012_v20  ;;  %3496 = vmatmul.mubr.msk.f32.gmra.mrb[26].mxu0 %vm403_vm3, %v1327_v24  ;;  %v3608_v7 = vpack.c.bf16 %v1520_v35, %v1518_v36  ;;  %v4100_v37 = vpop.permute.xlu0 %4099 }
 0x134   : > { %3617 = vmatpush1.bf16.msra.mxu0 %v3616_v26  ;;  %1459 = vmatprep.mubr.f32.mxu0 %v4543_v0  ;;  %v4102_v42 = vunpack.i.h.bf16 %v4100_v37  ;;  %v4101_v43 = vunpack.i.l.bf16 %v4100_v37  ;;  %v3470_v26 = vld [vmem:[%s5529_s1 + $0x1] ss:$2 sm:$0x3] }
 0x135   : > { %v1525_v39 = vsel %vm1517_vm7, %v4106_v28, %v4107_v27  ;;  %3488 = vmatmul.mubr.msk.f32.gmra.mrb[2].mxu1 %vm403_vm3, %v1026_v34  ;;  %v5078_v27 = vrot.slane %v315_v22, %v508_v21  ;;  %v5084_v30 = vrot.slane %v3470_v26, %v512_v25 }
 0x136   : > { %v4115_v33 = vpop.permute.xlu1 %4114  ;;  %3609 = vmatpush1.bf16.msra.mxu1 %v3608_v7  ;;  %v1523_v44 = vsel %vm1517_vm7, %v4101_v43, %v4102_v42  ;;  %1117 = vmatprep.mubr.f32.mxu1 %v4543_v0 }
 0x137   : > { %v4117_v40 = vunpack.i.h.bf16 %v4115_v33  ;;  %v4116_v41 = vunpack.i.l.bf16 %v4115_v33  ;;  %3497 = vmatmul.mubr.msk.f32.gmra.mrb[28].mxu0 %vm403_vm3, %v1328_v2  ;;  %v4110_v5 = vpop.permute.xlu0 %4109  ;;  %v3610_v11 = vpack.c.bf16 %v1525_v39, %v1523_v44 }
 0x138   : > { %1465 = vmatprep.mubr.f32.mxu0 %v4543_v0  ;;  %v4112_v48 = vunpack.i.h.bf16 %v4110_v5  ;;  %v4111_v49 = vunpack.i.l.bf16 %v4110_v5 }
 0x139   : > { %3489 = vmatmul.mubr.msk.f32.gmra.mrb[4].mxu1 %vm403_vm3, %v1027_v46  ;;  %v1680_v50 = vsel %vm1672_vm8, %v4116_v41, %v4117_v40  ;;  %3611 = vmatprep.subr.bf16.mxu1 %v3610_v11 }
 0x13a   : > { %v4125_v45 = vpop.permute.xlu1 %4124  ;;  %v1678_v53 = vsel %vm1672_vm8, %v4111_v49, %v4112_v48  ;;  %1123 = vmatprep.mubr.f32.mxu1 %v4543_v0 }
 0x13b   : > { %v4127_v38 = vunpack.i.h.bf16 %v4125_v45  ;;  %v4126_v1 = vunpack.i.l.bf16 %v4125_v45  ;;  %3498 = vmatmul.mubr.msk.f32.gmra.mrb[30].mxu0 %vm403_vm3, %v1329_v6  ;;  %v4120_v55 = vpop.permute.xlu0 %4119  ;;  %v3618_v3 = vpack.c.bf16 %v1680_v50, %v1678_v53 }
 0x13c   : > { %1765 = vmatprep.mubr.f32.mxu0 %v4543_v0  ;;  %v4122_v10 = vunpack.i.h.bf16 %v4120_v55  ;;  %v4121_v56 = vunpack.i.l.bf16 %v4120_v55 }
 0x13d   : > { %v1679_v47 = vsel %vm1672_vm8, %v4127_v38, %v4116_v41  ;;  %v1677_v52 = vsel %vm1672_vm8, %v4126_v1, %v4111_v49  ;;  %3490 = vmatmul.mubr.msk.f32.gmra.mrb[6].mxu1 %vm403_vm3, %v1028_v51  ;;  %3619 = vmatprep.subr.bf16.mxu0 %v3618_v3 }
 0x13e   : > { %v3620_v54 = vpack.c.bf16 %v1679_v47, %v1677_v52  ;;  %1610 = vmatprep.mubr.f32.mxu1 %v4543_v0  ;;  %v1524_v57 = vsel %vm1517_vm7, %v4122_v10, %v4106_v28  ;;  %v1522_v58 = vsel %vm1517_vm7, %v4121_v56, %v4101_v43  ;;  %v5080_v28 = vrot.slane %v3470_v26, %v508_v21 }
 0x13f   : > { %v3612_v60 = vpack.c.bf16 %v1524_v57, %v1522_v58 }
 0x140   : > { %3621 = vmatpush1.bf16.msra.mxu0 %v3620_v54 }
 0x141   : > { %3613 = vmatpush1.bf16.msra.mxu1 %v3612_v60 }
 0x143   : > { %3503 = vmatmul.mubr.msk.f32.vlgmr.msra.gmra.mrb[32].mxu0 %vm403_vm3, %v1644_v59 }
 0x144   : > { %1771 = vmatprep.mubr.f32.mxu0 %v4543_v0  ;;  %3499 = vmatmul.mubr.msk.f32.vlgmr.msra.gmra.mrb[0].mxu1 %vm403_vm3, %v1489_v61 }
 0x145   : > { %1616 = vmatprep.mubr.f32.mxu1 %v4543_v0 }
 0x147   : > { %3504 = vmatmul.mubr.msk.f32.gmra.mrb[34].mxu0 %vm403_vm3, %v1645_v62 }
 0x148   : > { %1777 = vmatprep.mubr.f32.mxu0 %v4543_v0  ;;  %3500 = vmatmul.mubr.msk.f32.gmra.mrb[2].mxu1 %vm403_vm3, %v1490_v63 }
 0x149   : > { %1622 = vmatprep.mubr.f32.mxu1 %v4543_v0 }
 0x14b   : > { %3505 = vmatmul.mubr.msk.f32.gmra.mrb[36].mxu0 %vm403_vm3, %v1646_v4 }
 0x14c   : > { %1783 = vmatprep.mubr.f32.mxu0 %v4543_v0  ;;  %3501 = vmatmul.mubr.msk.f32.gmra.mrb[4].mxu1 %vm403_vm3, %v1491_v8 }
 0x14d   : > { %1628 = vmatprep.mubr.f32.mxu1 %v4543_v0 }
 0x14f   : > { %3506 = vmatmul.mubr.msk.f32.gmra.mrb[38].mxu0 %vm403_vm3, %v1647_v9 }
 0x150   : > { %2160 = vmatprep.mubr.f32.mxu0 %v4543_v0  ;;  %3502 = vmatmul.mubr.msk.f32.gmra.mrb[6].mxu1 %vm403_vm3, %v1492_v12 }
 0x151   : > { %1998 = vmatprep.mubr.f32.mxu1 %v4543_v0 }
 0x1c4   : > { %v482_v13 = vpop.f32.mrb[0].mxu0 }
 0x1c5   : > { %v484_v14 = vpop.f32.mrb[1].mxu0  ;;  %v516_v31 = vmul.f32 %v5078_v27, %v482_v13 }
 0x1c6   : > { %v517_v35 = vmul.f32 %v5082_v29, %v484_v14 }
 0x1c8   : > { %v488_v16 = vpop.f32.mrb[2].mxu0 }
 0x1c9   : > { %v490_v17 = vpop.f32.mrb[3].mxu0  ;;  %v518_v2 = vmul.f32 %v5078_v27, %v488_v16 }
 0x1ca   : > { %v519_v42 = vmul.f32 %v5082_v29, %v490_v17 }
 0x1cc   : > { %v494_v19 = vpop.f32.mrb[4].mxu0 }
 0x1cd   : > { %v496_v20 = vpop.f32.mrb[5].mxu0  ;;  %v520_v45 = vmul.f32 %v5078_v27, %v494_v19 }
 0x1ce   : > { %v521_v5 = vmul.f32 %v5082_v29, %v496_v20 }
 0x1d0   : > { %v500_v23 = vpop.f32.mrb[6].mxu0 }
 0x1d1   : > { %v502_v24 = vpop.f32.mrb[7].mxu0  ;;  %v522_v47 = vmul.f32 %v5078_v27, %v500_v23 }
 0x1d2   : > { %v523_v53 = vmul.f32 %v5082_v29, %v502_v24 }
 0x1da   : > { %v811_v32 = vpop.f32.mrb[8].mxu0 }
 0x1db   : > { %v845_v33 = vmul.f32 %v5080_v28, %v811_v32  ;;  %v813_v34 = vpop.f32.mrb[9].mxu0 }
 0x1dc   : > { %v846_v36 = vmul.f32 %v5084_v30, %v813_v34 }
 0x1dd   : > { %v3694_v7 = vadd.f32 %v845_v33, %v516_v31 }
 0x1de   : > { %v3699_v37 = vadd.f32 %v846_v36, %v517_v35  ;;  %v817_v39 = vpop.f32.mrb[10].mxu0 }
 0x1df   : > { %v847_v40 = vmul.f32 %v5080_v28, %v817_v39  ;;  %v819_v41 = vpop.f32.mrb[11].mxu0 }
 0x1e0   : > { %v848_v43 = vmul.f32 %v5084_v30, %v819_v41 }
 0x1e1   : > { %v3704_v38 = vadd.f32 %v847_v40, %v518_v2 }
 0x1e2   : > { %v3709_v46 = vadd.f32 %v848_v43, %v519_v42  ;;  %v823_v1 = vpop.f32.mrb[12].mxu0 }
 0x1e3   : > { %v849_v6 = vmul.f32 %v5080_v28, %v823_v1  ;;  %v825_v44 = vpop.f32.mrb[13].mxu0 }
 0x1e4   : > { %v850_v11 = vmul.f32 %v5084_v30, %v825_v44 }
 0x1e5   : > { %v3714_v48 = vadd.f32 %v849_v6, %v520_v45 }
 0x1e6   : > { %v3719_v49 = vadd.f32 %v850_v11, %v521_v5  ;;  %v829_v50 = vpop.f32.mrb[14].mxu0 }
 0x1e7   : > { %v851_v51 = vmul.f32 %v5080_v28, %v829_v50  ;;  %v831_v52 = vpop.f32.mrb[15].mxu0 }
 0x1e8   : > { %v852_v54 = vmul.f32 %v5084_v30, %v831_v52 }
 0x1e9   : > { %v3724_v55 = vadd.f32 %v851_v51, %v522_v47 }
 0x1ea   : > { %v3729_v3 = vadd.f32 %v852_v54, %v523_v53 }
 0x1f2   : > { %v1286_v10 = vpop.f32.mrb[16].mxu0 }
 0x1f3   : > { %v1288_v56 = vpop.f32.mrb[17].mxu0  ;;  %v985_v57 = vpop.f32.mrb[8].mxu1  ;;  %v1309_v60 = vmul.f32 %v1286_v10, %v5080_v28 }
 0x1f4   : > { %v1008_v58 = vmul.f32 %v985_v57, %v5078_v27  ;;  %v987_v59 = vpop.f32.mrb[9].mxu1  ;;  %v1310_v63 = vmul.f32 %v1288_v56, %v5084_v30 }
 0x1f5   : > { %v1009_v62 = vmul.f32 %v987_v59, %v5082_v29 }
 0x1f6   : > { %v1292_v61 = vpop.f32.mrb[18].mxu0  ;;  %v3695_v8 = vadd.f32 %v3694_v7, %v1008_v58 }
 0x1f7   : > { %v1294_v4 = vpop.f32.mrb[19].mxu0  ;;  %v3700_v9 = vadd.f32 %v3699_v37, %v1009_v62  ;;  %v991_v12 = vpop.f32.mrb[10].mxu1  ;;  %v1311_v16 = vmul.f32 %v1292_v61, %v5080_v28 }
 0x1f8   : > { %v3696_v13 = vadd.f32 %v3695_v8, %v1309_v60  ;;  %v1010_v14 = vmul.f32 %v991_v12, %v5078_v27  ;;  %v993_v15 = vpop.f32.mrb[11].mxu1  ;;  %v1312_v20 = vmul.f32 %v1294_v4, %v5084_v30 }
 0x1f9   : > { %v3701_v18 = vadd.f32 %v3700_v9, %v1310_v63  ;;  %v1011_v19 = vmul.f32 %v993_v15, %v5082_v29 }
 0x1fa   : > { %v1298_v17 = vpop.f32.mrb[20].mxu0  ;;  %v3705_v22 = vadd.f32 %v3704_v38, %v1010_v14 }
 0x1fb   : > { %v1300_v21 = vpop.f32.mrb[21].mxu0  ;;  %v3710_v23 = vadd.f32 %v3709_v46, %v1011_v19  ;;  %v997_v24 = vpop.f32.mrb[12].mxu1  ;;  %v1313_v32 = vmul.f32 %v1298_v17, %v5080_v28 }
 0x1fc   : > { %v3706_v25 = vadd.f32 %v3705_v22, %v1311_v16  ;;  %v1012_v26 = vmul.f32 %v997_v24, %v5078_v27  ;;  %v999_v31 = vpop.f32.mrb[13].mxu1  ;;  %v1314_v36 = vmul.f32 %v1300_v21, %v5084_v30  ;;  %v1813_v22 = vpop.permute.xlu0 %1812 }
 0x1fd   : > { %v3711_v34 = vadd.f32 %v3710_v23, %v1312_v20  ;;  %v1013_v35 = vmul.f32 %v999_v31, %v5082_v29 }
 0x1fe   : > { %v1304_v33 = vpop.f32.mrb[22].mxu0  ;;  %v3715_v7 = vadd.f32 %v3714_v48, %v1012_v26 }
 0x1ff   : > { %v1306_v2 = vpop.f32.mrb[23].mxu0  ;;  %v3720_v37 = vadd.f32 %v3719_v49, %v1013_v35  ;;  %v1003_v39 = vpop.f32.mrb[14].mxu1  ;;  %v1315_v41 = vmul.f32 %v1304_v33, %v5080_v28 }
 0x200   : > { %v3716_v40 = vadd.f32 %v3715_v7, %v1313_v32  ;;  %v1014_v42 = vmul.f32 %v1003_v39, %v5078_v27  ;;  %v1005_v43 = vpop.f32.mrb[15].mxu1  ;;  %v1316_v46 = vmul.f32 %v1306_v2, %v5084_v30  ;;  %v1818_v7 = vpop.permute.xlu1 %1817 }
 0x201   : > { %v3721_v38 = vadd.f32 %v3720_v37, %v1314_v36  ;;  %v1015_v1 = vmul.f32 %v1005_v43, %v5082_v29 }
 0x202   : > { %v1449_v45 = vpop.f32.mrb[24].mxu0  ;;  %v3725_v5 = vadd.f32 %v3724_v55, %v1014_v42 }
 0x203   : > { %v1472_v6 = vmul.f32 %v1449_v45, %v5078_v27  ;;  %v1451_v44 = vpop.f32.mrb[25].mxu0  ;;  %v3730_v47 = vadd.f32 %v3729_v3, %v1015_v1 }
 0x204   : > { %v1473_v11 = vmul.f32 %v1451_v44, %v5082_v29  ;;  %v3726_v51 = vadd.f32 %v3725_v5, %v1315_v41 }
 0x205   : > { %v3697_v48 = vadd.f32 %v3696_v13, %v1472_v6  ;;  %v3731_v54 = vadd.f32 %v3730_v47, %v1316_v46 }
 0x206   : > { %v1455_v49 = vpop.f32.mrb[26].mxu0  ;;  %v3702_v50 = vadd.f32 %v3701_v18, %v1473_v11 }
 0x207   : > { %v1474_v52 = vmul.f32 %v1455_v49, %v5078_v27  ;;  %v1457_v53 = vpop.f32.mrb[27].mxu0 }
 0x208   : > { %v1475_v10 = vmul.f32 %v1457_v53, %v5082_v29 }
 0x209   : > { %v3707_v56 = vadd.f32 %v3706_v25, %v1474_v52 }
 0x20a   : > { %v1461_v57 = vpop.f32.mrb[28].mxu0  ;;  %v3712_v58 = vadd.f32 %v3711_v34, %v1475_v10  ;;  %v1823_v10 = vpop.permute.xlu1 %1822 }
 0x20b   : > { %v1476_v59 = vmul.f32 %v1461_v57, %v5078_v27  ;;  %v1463_v60 = vpop.f32.mrb[29].mxu0 }
 0x20c   : > { %v1477_v55 = vmul.f32 %v1463_v60, %v5082_v29 }
 0x20d   : > { %v3717_v61 = vadd.f32 %v3716_v40, %v1476_v59 }
 0x20e   : > { %v1467_v3 = vpop.f32.mrb[30].mxu0  ;;  %v3722_v62 = vadd.f32 %v3721_v38, %v1477_v55 }
 0x20f   : > { %v1478_v63 = vmul.f32 %v1467_v3, %v5078_v27  ;;  %v1469_v4 = vpop.f32.mrb[31].mxu0 }
 0x210   : > { %v1479_v8 = vmul.f32 %v1469_v4, %v5082_v29 }
 0x211   : > { %v3727_v9 = vadd.f32 %v3726_v51, %v1478_v63 }
 0x212   : > { %v3732_v12 = vadd.f32 %v3731_v54, %v1479_v8  ;;  %v1828_v8 = vpop.permute.xlu0 %1827 }
 0x216   : > { %v1767_v13 = vpop.f32.mrb[32].mxu0 }
 0x217   : > { %v1769_v14 = vpop.f32.mrb[33].mxu0  ;;  %v1790_v15 = vmul.f32 %v1767_v13, %v5080_v28  ;;  %v1612_v16 = vpop.f32.mrb[0].mxu1 }
 0x218   : > { %v1791_v17 = vmul.f32 %v1769_v14, %v5084_v30  ;;  %v3698_v18 = vadd.f32 %v3697_v48, %v1612_v16  ;;  %v1614_v19 = vpop.f32.mrb[1].mxu1 }
 0x219   : > { %v3703_v21 = vadd.f32 %v3702_v50, %v1614_v19 }
 0x21a   : > { %v1773_v20 = vpop.f32.mrb[34].mxu0  ;;  %v1798_v24 = vadd.f32 %v3698_v18, %v1790_v15 }
 0x21b   : > { %v1775_v23 = vpop.f32.mrb[35].mxu0  ;;  %v1792_v25 = vmul.f32 %v1773_v20, %v5080_v28  ;;  %v1799_v26 = vadd.f32 %v3703_v21, %v1791_v17  ;;  %v1618_v31 = vpop.f32.mrb[2].mxu1 }
 0x21c   : > { %v1793_v32 = vmul.f32 %v1775_v23, %v5084_v30  ;;  %v1830_v33 = vadd.f32 %v1813_v22, %v1798_v24  ;;  %v3708_v34 = vadd.f32 %v3707_v56, %v1618_v31  ;;  %v1620_v35 = vpop.f32.mrb[3].mxu1 }
 0x21d   : > { %v1831_v2 = vadd.f32 %v1813_v22, %v1799_v26  ;;  %v3713_v37 = vadd.f32 %v3712_v58, %v1620_v35  ;;  %v3298_v35 = vld [vmem:[%s5533_s5 + $0x18] sm:$0xff] }
 0x21e   : > { %v1779_v36 = vpop.f32.mrb[36].mxu0  ;;  %v5130_v40 = vmax.f32 %v1830_v33, 0.0  ;;  %v1800_v41 = vadd.f32 %v3708_v34, %v1792_v25  ;;  %v3296_v33 = vld [vmem:[%s5533_s5 + $0x8] sm:$0xff]  ;;  %v3297_v34 = vld [vmem:[%s5533_s5 + $0x10] sm:$0xff] }
 0x21f   : > { %v1781_v39 = vpop.f32.mrb[37].mxu0  ;;  %v1794_v42 = vmul.f32 %v1779_v36, %v5080_v28  ;;  %v5133_v43 = vmax.f32 %v1831_v2, 0.0  ;;  %v1801_v45 = vadd.f32 %v3713_v37, %v1793_v32  ;;  %v1624_v38 = vpop.f32.mrb[4].mxu1  ;;  %v3295_v32 = vld [vmem:[%s5533_s5] sm:$0xff] }
 0x220   : > { %v1795_v46 = vmul.f32 %v1781_v39, %v5084_v30  ;;  %v1832_v1 = vadd.f32 %v1818_v7, %v1800_v41  ;;  %v3718_v6 = vadd.f32 %v3717_v61, %v1624_v38  ;;  %v1626_v44 = vpop.f32.mrb[5].mxu1  ;;  %v4132_v36 = vpop.permute.xlu1 %4131 }
 0x221   : > { %v1833_v11 = vadd.f32 %v1818_v7, %v1801_v45  ;;  %v3723_v47 = vadd.f32 %v3722_v62, %v1626_v44  ;;  %v4150_v49 = vpack.i.bf16 %v5133_v43, %v5130_v40  ;;  %v4220_v25 = vpack.i.bf16 %v4543_v0, %v5133_v43  ;;  %v4137_v2 = vpop.permute.xlu0 %4136 }
 0x222   : > { %v1785_v5 = vpop.f32.mrb[38].mxu0  ;;  %v5139_v51 = vmax.f32 %v1832_v1, 0.0  ;;  %v1802_v52 = vadd.f32 %v3718_v6, %v1794_v42  ;;  %v4133_v45 = vunpack.i.l.bf16 %v4132_v36  ;;  %v4134_v1 = vunpack.i.h.bf16 %v4132_v36 }
 0x223   : > { %v1796_v48 = vmul.f32 %v1785_v5, %v5080_v28  ;;  %v1787_v50 = vpop.f32.mrb[39].mxu0  ;;  %v5142_v54 = vmax.f32 %v1833_v11, 0.0  ;;  %v1803_v56 = vadd.f32 %v3723_v47, %v1795_v46  ;;  %v1630_v57 = vpop.f32.mrb[6].mxu1  ;;  %4151 = vrot.lane.b32.xlu1 %v4150_v49, %s4544_s27 }
 0x224   : > { %v1797_v53 = vmul.f32 %v1787_v50, %v5084_v30  ;;  %v1834_v58 = vadd.f32 %v1823_v10, %v1802_v52  ;;  %v3728_v59 = vadd.f32 %v3727_v9, %v1630_v57  ;;  %v1632_v60 = vpop.f32.mrb[7].mxu1  ;;  %v4245_v55 = vpack.i.bf16 %v5139_v51, %v5130_v40  ;;  %v4142_v7 = vpop.permute.xlu1 %4141 }
 0x225   : > { %v1835_v61 = vadd.f32 %v1823_v10, %v1803_v56  ;;  %v3733_v3 = vadd.f32 %v3732_v12, %v1632_v60  ;;  %v4165_v62 = vpack.i.bf16 %v5142_v54, %v5139_v51  ;;  %v3654_v20 = vpack.c.bf16 %v5142_v54, %v5133_v43  ;;  %v5238_v37 = vpop.permute.xlu0 %4146 }
 0x226   : > { %v5149_v63 = vmax.f32 %v1834_v58, 0.0  ;;  %v1804_v4 = vadd.f32 %v3728_v59, %v1796_v48  ;;  %v3656_v21 = vpack.c.bf16 %v5139_v51, %v5130_v40  ;;  %v4225_v24 = vpack.i.bf16 %v4543_v0, %v5142_v54  ;;  %v2645_v40 = vld [vmem:[#allocation9 + $0xa8] sm:$0xff] }
 0x227   : > { %v5151_v13 = vmax.f32 %v1835_v61, 0.0  ;;  %v1805_v14 = vadd.f32 %v3733_v3, %v1797_v53  ;;  %4166 = vrot.lane.b32.xlu0 %v4165_v62, %s4544_s27  ;;  %4156 = vrot.lane.b32.xlu1 %v4150_v49, %s4545_s29  ;;  %v4144_v57 = vunpack.i.h.bf16 %v4142_v7  ;;  %v4143_v58 = vunpack.i.l.bf16 %v4142_v7 }
 0x228   : > { %v1836_v9 = vadd.f32 %v1828_v8, %v1804_v4 }
 0x229   : > { %v1837_v15 = vadd.f32 %v1828_v8, %v1805_v14  ;;  %v4185_v16 = vpack.i.bf16 %v5151_v13, %v5149_v63  ;;  %v4255_v26 = vpack.i.bf16 %v4543_v0, %v5151_v13 }
 0x22a   : > { %v5157_v12 = vmax.f32 %v1836_v9, 0.0 }
 0x22b   : > { %v5159_v17 = vmax.f32 %v1837_v15, 0.0  ;;  %4171 = vrot.lane.b32.xlu0 %v4165_v62, %s4545_s29  ;;  %4161 = vrot.lane.b32.xlu1 %v4150_v49, %s4546_s14 }
 0x22c   : > { %v4265_v18 = vpack.i.bf16 %v5157_v12, %v5149_v63  ;;  %v3660_v23 = vpack.c.bf16 %v5157_v12, %v5149_v63 }
 0x22d   : > { %v4190_v19 = vpack.i.bf16 %v5159_v17, %v5157_v12  ;;  %v3658_v22 = vpack.c.bf16 %v5159_v17, %v5151_v13  ;;  %v4280_v31 = vpack.i.bf16 %v4543_v0, %v5159_v17  ;;  %v2358_v13 = vld [vmem:[#allocation9 + $0x70] sm:$0xff] }
 0x22f   : > { %4176 = vrot.lane.b32.xlu0 %v4165_v62, %s4546_s14  ;;  %4186 = vrot.lane.b32.xlu1 %v4185_v16, %s4545_s29 }
 0x233   : > { %4181 = vrot.lane.b32.xlu0 %v4185_v16, %s4544_s27  ;;  %4191 = vrot.lane.b32.xlu1 %v4190_v19, %s4544_s27  ;;  %s5556_s27 = smov 113  }
 0x237   : > { %4206 = vrot.lane.b32.xlu0 %v4543_v0, %s4546_s14  ;;  %4196 = vrot.lane.b32.xlu1 %v4185_v16, %s4546_s14 }
 0x23b   : > { %4216 = vrot.lane.b32.xlu0 %v4165_v62, %s4547_s16  ;;  %4201 = vrot.lane.b32.xlu1 %v4543_v0, %s4545_s29 }
 0x23f   : > { %4226 = vrot.lane.b32.xlu0 %v4225_v24, %s5555_s8  ;;  %4211 = vrot.lane.b32.xlu1 %v4150_v49, %s4547_s16 }
 0x243   : > { %4236 = vrot.lane.b32.xlu0 %v4190_v19, %s4545_s29  ;;  %4221 = vrot.lane.b32.xlu1 %v4220_v25, %s5555_s8 }
 0x247   : > { %4241 = vrot.lane.b32.xlu0 %v4190_v19, %s4546_s14  ;;  %4231 = vrot.lane.b32.xlu1 %v4543_v0, %s4547_s16  ;;  %s5557_s14 = smov 111  }
 0x24b   : > { %4246 = vrot.lane.b32.xlu0 %v4245_v55, %s5555_s8  ;;  %4251 = vrot.lane.b32.xlu1 %v4185_v16, %s4547_s16 }
 0x24f   : > { %4266 = vrot.lane.b32.xlu0 %v4265_v18, %s5555_s8  ;;  %4256 = vrot.lane.b32.xlu1 %v4255_v26, %s5555_s8 }
 0x253   : > { %4276 = vrot.lane.b32.xlu0 %v4190_v19, %s4547_s16  ;;  %4261 = vrot.lane.b32.xlu1 %v4543_v0, %s4547_s16  ;;  %v4138_v19 = vunpack.i.l.bf16 %v4137_v2 }
 0x257   : > { %4281 = vrot.lane.b32.xlu0 %v4280_v31, %s5555_s8  ;;  %4271 = vrot.lane.b32.xlu1 %v4220_v25, %s5556_s27 }
 0x25b   : > { %4286 = vrot.lane.b32.xlu0 %v4225_v24, %s5556_s27  ;;  %4291 = vrot.lane.b32.xlu1 %v4245_v55, %s5556_s27 }
 0x25f   : > { %4296 = vrot.lane.b32.xlu0 %v4255_v26, %s5556_s27  ;;  %4306 = vrot.lane.b32.xlu1 %v4220_v25, %s4550_s20 }
 0x263   : > { %4301 = vrot.lane.b32.xlu0 %v4265_v18, %s5556_s27  ;;  %4316 = vrot.lane.b32.xlu1 %v4280_v31, %s5556_s27  ;;  %s3549_s27 = sshll.u32 %s4611_s25, 10  ;;  %s3352_s25 = scalar_lea.sflag [#allocation6], %s4762_s13 }
 0x264   : > { %s5479_s30 = scalar_lea.hbm %s5534_s6, %s3549_s27 }
 0x267   : > { %4311 = vrot.lane.b32.xlu0 %v4225_v24, %s4550_s20  ;;  %4321 = vrot.lane.b32.xlu1 %v4220_v25, %s5557_s14 }
 0x26b   : > { %4326 = vrot.lane.b32.xlu0 %v4225_v24, %s5557_s14  ;;  %4331 = vrot.lane.b32.xlu1 %v4245_v55, %s4550_s20 }
 0x26f   : > { %4336 = vrot.lane.b32.xlu0 %v4245_v55, %s5557_s14  ;;  %4341 = vrot.lane.b32.xlu1 %v4255_v26, %s4550_s20 }
 0x273   : > { %4356 = vrot.lane.b32.xlu0 %v4280_v31, %s4550_s20  ;;  %4346 = vrot.lane.b32.xlu1 %v4255_v26, %s5557_s14 }
 0x277   : > { %4361 = vrot.lane.b32.xlu0 %v4280_v31, %s5557_s14  ;;  %4351 = vrot.lane.b32.xlu1 %v4265_v18, %s4550_s20  ;;  %s5558_s20 = sshll.u32 %s4762_s13, 6 }
 0x278   : > { %s5458_s8 = scalar_lea.vmem [#allocation10], %s5558_s20 }
 0x27b   : > { %4366 = vrot.lane.b32.xlu0 %v4265_v18, %s5557_s14  ;;  %3301 = vperm.xlu1 %4129, %v3295_v32   ;;  %v4139_v18 = vunpack.i.h.bf16 %v4137_v2  ;;  %v4149_v2 = vunpack.i.h.bf16 %v5238_v37  ;;  %s3365_s14 = sshll.u32 %s5458_s8, 4  ;;  %s5481_s14 = int_to_ptr.vmem [resolvable:$true] %s3365_s14 }
 0x27c   : > { %s4464_s19 = scalar_lea.vmem %s5481_s14, 1024 }
 0x27d   : > { %p4465_p11 = scmp.ne.s32.totalorder %s5481_s14, %s4464_s19 }
 0x27f   : > { %3306 = vperm.xlu0 %4128, %v3296_v33   ;;  %3311 = vperm.xlu1 %4129, %v3297_v34   ;;  %p4466_p1 = pnand %p4465_p11, %p5559_p0 }
 0x281   : > { %p4467_p3 = pneg %p4466_p1 }
 0x283   : > { %3316 = vperm.xlu0 %4128, %v3298_v35  }
 0x295   : > { %v4152_v39 = vpop.permute.xlu1 %4151 }
 0x296   : > { %v4154_v41 = vunpack.i.h.bf16 %v4152_v39  ;;  %v4153_v42 = vunpack.i.l.bf16 %v4152_v39 }
 0x298   : > { %v1906_v5 = vsel %vm386_vm0, %v4133_v45, %v4153_v42  ;;  %v1907_v11 = vsel %vm386_vm0, %v4153_v42, %v4154_v41 }
 0x299   : > { %v4167_v38 = vpop.permute.xlu0 %4166  ;;  %v4157_v46 = vpop.permute.xlu1 %4156 }
 0x29a   : > { %v4169_v6 = vunpack.i.h.bf16 %v4167_v38  ;;  %v4168_v44 = vunpack.i.l.bf16 %v4167_v38  ;;  %v4159_v48 = vunpack.i.h.bf16 %v4157_v46  ;;  %v4158_v49 = vunpack.i.l.bf16 %v4157_v46 }
 0x29c   : > { %v1908_v47 = vsel %vm386_vm0, %v4134_v1, %v4168_v44  ;;  %v1909_v50 = vsel %vm386_vm0, %v4168_v44, %v4169_v6  ;;  %v2068_v55 = vsel %vm561_vm1, %v4143_v58, %v4158_v49  ;;  %v2069_v3 = vsel %vm561_vm1, %v4158_v49, %v4159_v48 }
 0x29d   : > { %v3624_v52 = vpack.c.bf16 %v1908_v47, %v1906_v5  ;;  %v4172_v53 = vpop.permute.xlu0 %4171  ;;  %v4162_v10 = vpop.permute.xlu1 %4161  ;;  %v3622_v56 = vpack.c.bf16 %v1909_v50, %v1907_v11  ;;  %v4148_v44 = vunpack.i.l.bf16 %v5238_v37  ;;  %v1866_v47 = vld [vmem:[#allocation9] sm:$0xff] }
 0x29e   : > { %v4174_v59 = vunpack.i.h.bf16 %v4172_v53  ;;  %v4173_v60 = vunpack.i.l.bf16 %v4172_v53  ;;  %v4164_v24 = vunpack.i.h.bf16 %v4162_v10  ;;  %v4163_v25 = vunpack.i.l.bf16 %v4162_v10  ;;  %v1867_v53 = vld [vmem:[#allocation9 + $0x8] sm:$0xff] }
 0x29f   : > { %3623 = vmatprep.subr.bf16.mxu1 %v3622_v56 }
 0x2a0   : > { %v2070_v61 = vsel %vm561_vm1, %v4144_v57, %v4173_v60  ;;  %3625 = vmatpush1.bf16.msra.mxu1 %v3624_v52  ;;  %v2071_v62 = vsel %vm561_vm1, %v4173_v60, %v4174_v59  ;;  %v2223_v6 = vsel %vm716_vm2, %v4163_v25, %v4164_v24  ;;  %v2222_v48 = vsel %vm716_vm2, %v4148_v44, %v4163_v25 }
 0x2a1   : > { %v3632_v4 = vpack.c.bf16 %v2070_v61, %v2068_v55  ;;  %v4177_v8 = vpop.permute.xlu0 %4176  ;;  %v5248_v14 = vpop.permute.xlu1 %4186  ;;  %v3630_v9 = vpack.c.bf16 %v2071_v62, %v2069_v3 }
 0x2a2   : > { %v4179_v15 = vunpack.i.h.bf16 %v4177_v8  ;;  %v4178_v16 = vunpack.i.l.bf16 %v4177_v8  ;;  %v4189_v37 = vunpack.i.h.bf16 %v5248_v14  ;;  %v4188_v10 = vunpack.i.l.bf16 %v5248_v14 }
 0x2a3   : > { %3631 = vmatprep.subr.bf16.mxu0 %v3630_v9 }
 0x2a4   : > { %3633 = vmatpush1.bf16.msra.mxu0 %v3632_v4  ;;  %v2225_v36 = vsel %vm716_vm2, %v4178_v16, %v4179_v15  ;;  %v2224_v5 = vsel %vm716_vm2, %v4149_v2, %v4178_v16  ;;  %v1868_v4 = vld [vmem:[#allocation9 + $0x10] sm:$0xff]  ;;  %v2073_v15 = vsel %vm561_vm1, %v4188_v10, %v4189_v37 }
 0x2a5   : > { %v4182_v26 = vpop.permute.xlu0 %4181  ;;  %v4192_v31 = vpop.permute.xlu1 %4191  ;;  %v3638_v11 = vpack.c.bf16 %v2225_v36, %v2223_v6  ;;  %v3640_v52 = vpack.c.bf16 %v2224_v5, %v2222_v48 }
 0x2a6   : > { %v4184_v32 = vunpack.i.h.bf16 %v4182_v26  ;;  %v4183_v33 = vunpack.i.l.bf16 %v4182_v26  ;;  %v4194_v34 = vunpack.i.h.bf16 %v4192_v31  ;;  %v4193_v35 = vunpack.i.l.bf16 %v4192_v31 }
 0x2a8   : > { %v1910_v7 = vsel %vm386_vm0, %v4138_v19, %v4183_v33  ;;  %v1912_v39 = vsel %vm386_vm0, %v4139_v18, %v4193_v35  ;;  %v1911_v41 = vsel %vm386_vm0, %v4183_v33, %v4184_v32  ;;  %v1913_v42 = vsel %vm386_vm0, %v4193_v35, %v4194_v34 }
 0x2a9   : > { %v3628_v45 = vpack.c.bf16 %v1912_v39, %v1910_v7  ;;  %v5256_v38 = vpop.permute.xlu0 %4206  ;;  %v5258_v46 = vpop.permute.xlu1 %4196  ;;  %v3626_v1 = vpack.c.bf16 %v1913_v42, %v1911_v41  ;;  %v1869_v7 = vld [vmem:[#allocation9 + $0x18] sm:$0xff] }
 0x2aa   : > { %v4208_v58 = vunpack.i.l.bf16 %v5256_v38  ;;  %v4198_v59 = vunpack.i.l.bf16 %v5258_v46  ;;  %v4209_v8 = vunpack.i.h.bf16 %v5256_v38  ;;  %v4199_v16 = vunpack.i.h.bf16 %v5258_v46 }
 0x2ab   : > { %3627 = vmatprep.subr.bf16.mxu1 %v3626_v1 }
 0x2ac   : > { %3629 = vmatpush1.bf16.msra.mxu1 %v3628_v45  ;;  %v2226_v25 = vsel %vm716_vm2, %v4208_v58, %v4198_v59 }
 0x2ad   : > { %v4217_v49 = vpop.permute.xlu0 %4216  ;;  %v4202_v50 = vpop.permute.xlu1 %4201  ;;  %3639 = vmatprep.subr.bf16.mxu1 %v3638_v11  ;;  %v2227_v11 = vsel %vm716_vm2, %v4198_v59, %v4199_v16 }
 0x2ae   : > { %v4203_v60 = vunpack.i.l.bf16 %v4202_v50  ;;  %v4219_v55 = vunpack.i.h.bf16 %v4217_v49  ;;  %v4218_v61 = vunpack.i.l.bf16 %v4217_v49  ;;  %v4204_v18 = vunpack.i.h.bf16 %v4202_v50 }
 0x2af   : > { %3507 = vmatmul.mubr.msk.f32.vlgmr.msra.gmra.mrb[16].mxu1 %vm403_vm3, %v1866_v47 }
 0x2b0   : > { %3641 = vmatpush1.bf16.msra.mxu1 %v3640_v52  ;;  %2004 = vmatprep.mubr.f32.mxu1 %v4543_v0  ;;  %v2072_v26 = vsel %vm561_vm1, %v4203_v60, %v4188_v10  ;;  %v2387_v36 = vsel %vm890_vm4, %v4218_v61, %v4219_v55  ;;  %v2040_v52 = vld [vmem:[#allocation9 + $0x20] sm:$0xff] }
 0x2b1   : > { %v5268_v56 = vpop.permute.xlu0 %4226  ;;  %v4212_v57 = vpop.permute.xlu1 %4211 }
 0x2b2   : > { %v4214_v3 = vunpack.i.h.bf16 %v4212_v57  ;;  %v4213_v62 = vunpack.i.l.bf16 %v4212_v57  ;;  %v4229_v39 = vunpack.i.h.bf16 %v5268_v56  ;;  %v4228_v41 = vunpack.i.l.bf16 %v5268_v56 }
 0x2b3   : > { %3508 = vmatmul.mubr.msk.f32.gmra.mrb[18].mxu1 %vm403_vm3, %v1867_v53 }
 0x2b4   : > { %2010 = vmatprep.mubr.f32.mxu1 %v4543_v0  ;;  %v2385_v35 = vsel %vm890_vm4, %v4213_v62, %v4214_v3  ;;  %v2687_v55 = vsel %vm1191_vm5, %v4228_v41, %v4229_v39 }
 0x2b5   : > { %v4237_v14 = vpop.permute.xlu0 %4236  ;;  %v4222_v9 = vpop.permute.xlu1 %4221  ;;  %v3646_v5 = vpack.c.bf16 %v2387_v36, %v2385_v35 }
 0x2b6   : > { %v4239_v19 = vunpack.i.h.bf16 %v4237_v14  ;;  %v4238_v24 = vunpack.i.l.bf16 %v4237_v14  ;;  %v4224_v31 = vunpack.i.h.bf16 %v4222_v9  ;;  %v4223_v32 = vunpack.i.l.bf16 %v4222_v9 }
 0x2b7   : > { %3509 = vmatmul.mubr.msk.f32.gmra.mrb[20].mxu1 %vm403_vm3, %v1868_v4  ;;  %v2041_v4 = vld [vmem:[#allocation9 + $0x28] sm:$0xff] }
 0x2b8   : > { %v2074_v33 = vsel %vm561_vm1, %v4204_v18, %v4238_v24  ;;  %v2075_v34 = vsel %vm561_vm1, %v4238_v24, %v4239_v19  ;;  %2016 = vmatprep.mubr.f32.mxu1 %v4543_v0  ;;  %v2685_v47 = vsel %vm1191_vm5, %v4223_v32, %v4224_v31  ;;  %v2042_v19 = vld [vmem:[#allocation9 + $0x30] sm:$0xff]  ;;  %v2195_v24 = vld [vmem:[#allocation9 + $0x48] sm:$0xff] }
 0x2b9   : > { %v3636_v42 = vpack.c.bf16 %v2074_v33, %v2072_v26  ;;  %v4242_v2 = vpop.permute.xlu0 %4241  ;;  %v4232_v45 = vpop.permute.xlu1 %4231  ;;  %v3634_v38 = vpack.c.bf16 %v2075_v34, %v2073_v15 }
 0x2ba   : > { %v4244_v46 = vunpack.i.h.bf16 %v4242_v2  ;;  %v4243_v1 = vunpack.i.l.bf16 %v4242_v2  ;;  %v4234_v6 = vunpack.i.h.bf16 %v4232_v45  ;;  %v4233_v44 = vunpack.i.l.bf16 %v4232_v45  ;;  %v2043_v2 = vld [vmem:[#allocation9 + $0x38] sm:$0xff]  ;;  %v2196_v45 = vld [vmem:[#allocation9 + $0x50] sm:$0xff] }
 0x2bb   : > { %3635 = vmatprep.subr.bf16.mxu0 %v3634_v38  ;;  %3510 = vmatmul.mubr.msk.f32.gmra.mrb[22].mxu1 %vm403_vm3, %v1869_v7 }
 0x2bc   : > { %v2228_v48 = vsel %vm716_vm2, %v4209_v8, %v4243_v1  ;;  %v2386_v49 = vsel %vm890_vm4, %v4234_v6, %v4218_v61  ;;  %v2384_v50 = vsel %vm890_vm4, %v4233_v44, %v4213_v62  ;;  %3637 = vmatpush1.bf16.msra.mxu0 %v3636_v42  ;;  %v2229_v53 = vsel %vm716_vm2, %v4243_v1, %v4244_v46  ;;  %v2194_v8 = vld [vmem:[#allocation9 + $0x40] sm:$0xff] }
 0x2bd   : > { %v3644_v37 = vpack.c.bf16 %v2228_v48, %v2226_v25  ;;  %v3648_v10 = vpack.c.bf16 %v2386_v49, %v2384_v50  ;;  %v4247_v56 = vpop.permute.xlu0 %4246  ;;  %v4252_v57 = vpop.permute.xlu1 %4251  ;;  %3647 = vmatprep.subr.bf16.mxu0 %v3646_v5  ;;  %v3642_v58 = vpack.c.bf16 %v2229_v53, %v2227_v11  ;;  %2314 = vmatprep.mubr.f32.mxu1 %v4543_v0  ;;  %v2197_v53 = vld [vmem:[#allocation9 + $0x58] sm:$0xff] }
 0x2be   : > { %v4249_v59 = vunpack.i.h.bf16 %v4247_v56  ;;  %v4248_v60 = vunpack.i.l.bf16 %v4247_v56  ;;  %v3662_v61 = vpack.c.bf16 %v2687_v55, %v2685_v47  ;;  %v4254_v16 = vunpack.i.h.bf16 %v4252_v57 }
 0x2bf   : > { %3511 = vmatmul.mubr.msk.f32.vlgmr.msra.gmra.mrb[40].mxu0 %vm403_vm3, %v2040_v52  ;;  %3643 = vmatprep.subr.bf16.mxu1 %v3642_v58  ;;  %v4253_v18 = vunpack.i.l.bf16 %v4252_v57 }
 0x2c0   : > { %v2686_v3 = vsel %vm1191_vm5, %v4249_v59, %v4228_v41  ;;  %v2684_v62 = vsel %vm1191_vm5, %v4248_v60, %v4223_v32  ;;  %3645 = vmatpush1.bf16.msra.mxu1 %v3644_v37  ;;  %3649 = vmatpush1.bf16.msra.mxu0 %v3648_v10  ;;  %v2356_v59 = vld [vmem:[#allocation9 + $0x60] sm:$0xff] }
 0x2c1   : > { %v3664_v14 = vpack.c.bf16 %v2686_v3, %v2684_v62  ;;  %v4267_v9 = vpop.permute.xlu0 %4266  ;;  %v4257_v15 = vpop.permute.xlu1 %4256  ;;  %3663 = vmatprep.subr.bf16.mxu1 %v3662_v61  ;;  %2166 = vmatprep.mubr.f32.mxu0 %v4543_v0  ;;  %v2389_v7 = vsel %vm890_vm4, %v4253_v18, %v4254_v16 }
 0x2c2   : > { %v4268_v35 = vunpack.i.l.bf16 %v4267_v9  ;;  %v4258_v36 = vunpack.i.l.bf16 %v4257_v15  ;;  %v4259_v39 = vunpack.i.h.bf16 %v4257_v15  ;;  %v4269_v5 = vunpack.i.h.bf16 %v4267_v9  ;;  %v2644_v9 = vld [vmem:[#allocation9 + $0xa0] sm:$0xff] }
 0x2c3   : > { %3512 = vmatmul.mubr.msk.f32.gmra.mrb[42].mxu0 %vm403_vm3, %v2041_v4  ;;  %3515 = vmatmul.mubr.msk.f32.vlgmr.msra.gmra.mrb[24].mxu1 %vm403_vm3, %v2194_v8 }
 0x2c4   : > { %3665 = vmatpush1.bf16.msra.mxu1 %v3664_v14  ;;  %2172 = vmatprep.mubr.f32.mxu0 %v4543_v0  ;;  %v2688_v48 = vsel %vm1191_vm5, %v4268_v35, %v4258_v36  ;;  %v2689_v37 = vsel %vm1191_vm5, %v4258_v36, %v4259_v39  ;;  %v2359_v39 = vld [vmem:[#allocation9 + $0x78] sm:$0xff] }
 0x2c5   : > { %v4277_v25 = vpop.permute.xlu0 %4276  ;;  %v4262_v26 = vpop.permute.xlu1 %4261  ;;  %2320 = vmatprep.mubr.f32.mxu1 %v4543_v0 }
 0x2c6   : > { %v4279_v31 = vunpack.i.h.bf16 %v4277_v25  ;;  %v4278_v32 = vunpack.i.l.bf16 %v4277_v25  ;;  %v4264_v33 = vunpack.i.h.bf16 %v4262_v26  ;;  %v4263_v34 = vunpack.i.l.bf16 %v4262_v26 }
 0x2c7   : > { %3513 = vmatmul.mubr.msk.f32.gmra.mrb[44].mxu0 %vm403_vm3, %v2042_v19  ;;  %3516 = vmatmul.mubr.msk.f32.gmra.mrb[26].mxu1 %vm403_vm3, %v2195_v24 }
 0x2c8   : > { %v2390_v41 = vsel %vm890_vm4, %v4264_v33, %v4278_v32  ;;  %v2388_v42 = vsel %vm890_vm4, %v4263_v34, %v4253_v18  ;;  %2178 = vmatprep.mubr.f32.mxu0 %v4543_v0  ;;  %2326 = vmatprep.mubr.f32.mxu1 %v4543_v0  ;;  %v2391_v38 = vsel %vm890_vm4, %v4278_v32, %v4279_v31  ;;  %v2646_v33 = vld [vmem:[#allocation9 + $0xb0] sm:$0xff] }
 0x2c9   : > { %v3652_v46 = vpack.c.bf16 %v2390_v41, %v2388_v42  ;;  %v4282_v1 = vpop.permute.xlu0 %4281  ;;  %v4272_v6 = vpop.permute.xlu1 %4271  ;;  %v3650_v44 = vpack.c.bf16 %v2391_v38, %v2389_v7 }
 0x2ca   : > { %v4284_v11 = vunpack.i.h.bf16 %v4282_v1  ;;  %v4283_v47 = vunpack.i.l.bf16 %v4282_v1  ;;  %v4274_v49 = vunpack.i.h.bf16 %v4272_v6  ;;  %v4273_v50 = vunpack.i.l.bf16 %v4272_v6 }
 0x2cb   : > { %3514 = vmatmul.mubr.msk.f32.gmra.mrb[46].mxu0 %vm403_vm3, %v2043_v2  ;;  %3517 = vmatmul.mubr.msk.f32.gmra.mrb[28].mxu1 %vm403_vm3, %v2196_v45 }
 0x2cc   : > { %v2690_v52 = vsel %vm1191_vm5, %v4269_v5, %v4283_v47  ;;  %3651 = vmatprep.subr.bf16.mxu0 %v3650_v44  ;;  %2332 = vmatprep.mubr.f32.mxu1 %v4543_v0  ;;  %v2691_v10 = vsel %vm1191_vm5, %v4283_v47, %v4284_v11  ;;  %v2847_v4 = vsel %vm1354_vm6, %v4273_v50, %v4274_v49  ;;  %v2518_v47 = vld [vmem:[#allocation9 + $0x80] sm:$0xff] }
 0x2cd   : > { %v3668_v56 = vpack.c.bf16 %v2690_v52, %v2688_v48  ;;  %3653 = vmatpush1.bf16.msra.mxu0 %v3652_v46  ;;  %v4287_v57 = vpop.permute.xlu0 %4286  ;;  %v4292_v58 = vpop.permute.xlu1 %4291  ;;  %2476 = vmatprep.mubr.f32.mxu0 %v4543_v0  ;;  %v3666_v60 = vpack.c.bf16 %v2691_v10, %v2689_v37  ;;  %v2647_v46 = vld [vmem:[#allocation9 + $0xb8] sm:$0xff] }
 0x2ce   : > { %v4289_v55 = vunpack.i.h.bf16 %v4287_v57  ;;  %v4288_v61 = vunpack.i.l.bf16 %v4287_v57  ;;  %v4294_v3 = vunpack.i.h.bf16 %v4292_v58  ;;  %v4293_v62 = vunpack.i.l.bf16 %v4292_v58  ;;  %3655 = vmatprep.subr.bf16.mxu0 %v3654_v20  ;;  %v2357_v20 = vld [vmem:[#allocation9 + $0x68] sm:$0xff] }
 0x2cf   : > { %3518 = vmatmul.mubr.msk.f32.gmra.mrb[30].mxu1 %vm403_vm3, %v2197_v53  ;;  %3667 = vmatprep.subr.bf16.mxu1 %v3666_v60 }
 0x2d0   : > { %v2848_v8 = vsel %vm1354_vm6, %v4294_v3, %v4288_v61  ;;  %v2846_v14 = vsel %vm1354_vm6, %v4293_v62, %v4273_v50  ;;  %3519 = vmatmul.mubr.msk.f32.vlgmr.msra.gmra.mrb[48].mxu0 %vm403_vm3, %v2356_v59  ;;  %3669 = vmatpush1.bf16.msra.mxu1 %v3668_v56  ;;  %v2849_v15 = vsel %vm1354_vm6, %v4288_v61, %v4289_v55  ;;  %v2818_v56 = vld [vmem:[#allocation9 + $0xc0] sm:$0xff]  ;;  %v2519_v61 = vld [vmem:[#allocation9 + $0x88] sm:$0xff] }
 0x2d1   : > { %v3672_v16 = vpack.c.bf16 %v2848_v8, %v2846_v14  ;;  %3657 = vmatpush1.bf16.msra.mxu0 %v3656_v21  ;;  %v4297_v43 = vpop.permute.xlu0 %4296  ;;  %v5332_v54 = vpop.permute.xlu1 %4306  ;;  %2482 = vmatprep.mubr.f32.mxu0 %v4543_v0  ;;  %v3670_v18 = vpack.c.bf16 %v2849_v15, %v2847_v4  ;;  %v2819_v15 = vld [vmem:[#allocation9 + $0xc8] sm:$0xff] }
 0x2d2   : > { %3659 = vmatprep.subr.bf16.mxu0 %v3658_v22  ;;  %2776 = vmatprep.mubr.f32.mxu1 %v4543_v0  ;;  %v4299_v19 = vunpack.i.h.bf16 %v4297_v43  ;;  %v4298_v24 = vunpack.i.l.bf16 %v4297_v43  ;;  %v4309_v31 = vunpack.i.h.bf16 %v5332_v54  ;;  %v4308_v63 = vunpack.i.l.bf16 %v5332_v54 }
 0x2d3   : > { %3527 = vmatmul.mubr.msk.f32.vlgmr.msra.gmra.mrb[32].mxu1 %vm403_vm3, %v2644_v9  ;;  %3671 = vmatprep.subr.bf16.mxu1 %v3670_v18 }
 0x2d4   : > { %3520 = vmatmul.mubr.msk.f32.gmra.mrb[50].mxu0 %vm403_vm3, %v2357_v20  ;;  %3673 = vmatpush1.bf16.msra.mxu1 %v3672_v16  ;;  %v2851_v32 = vsel %vm1354_vm6, %v4298_v24, %v4299_v19  ;;  %v3009_v1 = vsel %vm1517_vm7, %v4308_v63, %v4309_v31  ;;  %v2520_v20 = vld [vmem:[#allocation9 + $0x90] sm:$0xff] }
 0x2d5   : > { %3661 = vmatpush1.bf16.msra.mxu0 %v3660_v23  ;;  %v4302_v51 = vpop.permute.xlu0 %4301  ;;  %v4317_v21 = vpop.permute.xlu1 %4316  ;;  %2488 = vmatprep.mubr.f32.mxu0 %v4543_v0 }
 0x2d6   : > { %v4304_v17 = vunpack.i.h.bf16 %v4302_v51  ;;  %v4303_v22 = vunpack.i.l.bf16 %v4302_v51  ;;  %v4319_v25 = vunpack.i.h.bf16 %v4317_v21  ;;  %v4318_v26 = vunpack.i.l.bf16 %v4317_v21  ;;  %2782 = vmatprep.mubr.f32.mxu1 %v4543_v0  ;;  %v2820_v51 = vld [vmem:[#allocation9 + $0xd0] sm:$0xff] }
 0x2d7   : > { %3528 = vmatmul.mubr.msk.f32.gmra.mrb[34].mxu1 %vm403_vm3, %v2645_v40 }
 0x2d8   : > { %v2850_v12 = vsel %vm1354_vm6, %v4303_v22, %v4298_v24  ;;  %v2852_v23 = vsel %vm1354_vm6, %v4304_v17, %v4318_v26  ;;  %3521 = vmatmul.mubr.msk.f32.gmra.mrb[52].mxu0 %vm403_vm3, %v2358_v13  ;;  %2788 = vmatprep.mubr.f32.mxu1 %v4543_v0  ;;  %v2853_v34 = vsel %vm1354_vm6, %v4318_v26, %v4319_v25  ;;  %v2521_v26 = vld [vmem:[#allocation9 + $0x98] sm:$0xff] }
 0x2d9   : > { %v3676_v35 = vpack.c.bf16 %v2852_v23, %v2850_v12  ;;  %v4312_v36 = vpop.permute.xlu0 %4311  ;;  %v4322_v7 = vpop.permute.xlu1 %4321  ;;  %2494 = vmatprep.mubr.f32.mxu0 %v4543_v0  ;;  %v3674_v41 = vpack.c.bf16 %v2853_v34, %v2851_v32 }
 0x2da   : > { %v4314_v42 = vunpack.i.h.bf16 %v4312_v36  ;;  %v4313_v2 = vunpack.i.l.bf16 %v4312_v36  ;;  %v4324_v45 = vunpack.i.h.bf16 %v4322_v7  ;;  %v4323_v38 = vunpack.i.l.bf16 %v4322_v7 }
 0x2db   : > { %3529 = vmatmul.mubr.msk.f32.gmra.mrb[36].mxu1 %vm403_vm3, %v2646_v33  ;;  %3675 = vmatprep.subr.bf16.mxu1 %v3674_v41 }
 0x2dc   : > { %3522 = vmatmul.mubr.msk.f32.gmra.mrb[54].mxu0 %vm403_vm3, %v2359_v39  ;;  %3677 = vmatpush1.bf16.msra.mxu1 %v3676_v35  ;;  %v3011_v6 = vsel %vm1517_vm7, %v4313_v2, %v4314_v42  ;;  %v3163_v53 = vsel %vm1672_vm8, %v4323_v38, %v4324_v45  ;;  %v2821_v35 = vld [vmem:[#allocation9 + $0xd8] sm:$0xff]  ;;  %v2980_v45 = vld [vmem:[#allocation9 + $0xe0] sm:$0xff] }
 0x2dd   : > { %v4327_v44 = vpop.permute.xlu0 %4326  ;;  %v4332_v5 = vpop.permute.xlu1 %4331  ;;  %2794 = vmatprep.mubr.f32.mxu1 %v4543_v0  ;;  %v3678_v11 = vpack.c.bf16 %v3011_v6, %v3009_v1  ;;  %2598 = vmatprep.mubr.f32.mxu0 %v4543_v0  ;;  %v2981_v6 = vld [vmem:[#allocation9 + $0xe8] sm:$0xff] }
 0x2de   : > { %v4329_v48 = vunpack.i.h.bf16 %v4327_v44  ;;  %v4328_v49 = vunpack.i.l.bf16 %v4327_v44  ;;  %v4334_v50 = vunpack.i.h.bf16 %v4332_v5  ;;  %v4333_v52 = vunpack.i.l.bf16 %v4332_v5  ;;  %v3134_v44 = vld [vmem:[#allocation9 + $0x100] sm:$0xff]  ;;  %v2982_v5 = vld [vmem:[#allocation9 + $0xf0] sm:$0xff] }
 0x2df   : > { %3530 = vmatmul.mubr.msk.f32.gmra.mrb[38].mxu1 %vm403_vm3, %v2647_v46  ;;  %3679 = vmatprep.subr.bf16.mxu0 %v3678_v11  ;;  %v3135_v11 = vld [vmem:[#allocation9 + $0x108] sm:$0xff] }
 0x2e0   : > { %v3010_v37 = vsel %vm1517_vm7, %v4334_v50, %v4313_v2  ;;  %v3008_v10 = vsel %vm1517_vm7, %v4333_v52, %v4308_v63  ;;  %3523 = vmatmul.mubr.msk.f32.vlgmr.msra.gmra.mrb[40].mxu0 %vm403_vm3, %v2518_v47  ;;  %2938 = vmatprep.mubr.f32.mxu1 %v4543_v0  ;;  %v3165_v57 = vsel %vm1672_vm8, %v4328_v49, %v4329_v48  ;;  %v2983_v47 = vld [vmem:[#allocation9 + $0xf8] sm:$0xff]  ;;  %v3136_v48 = vld [vmem:[#allocation9 + $0x110] sm:$0xff] }
 0x2e1   : > { %v3680_v58 = vpack.c.bf16 %v3010_v37, %v3008_v10  ;;  %v4337_v59 = vpop.permute.xlu0 %4336  ;;  %v4342_v60 = vpop.permute.xlu1 %4341  ;;  %v3686_v55 = vpack.c.bf16 %v3165_v57, %v3163_v53  ;;  %2604 = vmatprep.mubr.f32.mxu0 %v4543_v0 }
 0x2e2   : > { %v4339_v3 = vunpack.i.h.bf16 %v4337_v59  ;;  %v4338_v62 = vunpack.i.l.bf16 %v4337_v59  ;;  %v4344_v14 = vunpack.i.h.bf16 %v4342_v60  ;;  %v4343_v9 = vunpack.i.l.bf16 %v4342_v60 }
 0x2e3   : > { %3531 = vmatmul.mubr.msk.f32.vlgmr.msra.gmra.mrb[40].mxu1 %vm403_vm3, %v2818_v56  ;;  %3681 = vmatpush1.bf16.msra.mxu0 %v3680_v58 }
 0x2e4   : > { %v3162_v4 = vsel %vm1672_vm8, %v4338_v62, %v4323_v38  ;;  %v3164_v8 = vsel %vm1672_vm8, %v4339_v3, %v4328_v49  ;;  %3687 = vmatprep.subr.bf16.mxu1 %v3686_v55  ;;  %3524 = vmatmul.mubr.msk.f32.gmra.mrb[42].mxu0 %vm403_vm3, %v2519_v61  ;;  %v3013_v21 = vsel %vm1517_vm7, %v4343_v9, %v4344_v14  ;;  %v3137_v49 = vld [vmem:[#allocation9 + $0x118] sm:$0xff] }
 0x2e5   : > { %v3688_v16 = vpack.c.bf16 %v3164_v8, %v3162_v4  ;;  %v4357_v43 = vpop.permute.xlu0 %4356  ;;  %v4347_v54 = vpop.permute.xlu1 %4346  ;;  %2944 = vmatprep.mubr.f32.mxu1 %v4543_v0  ;;  %2610 = vmatprep.mubr.f32.mxu0 %v4543_v0 }
 0x2e6   : > { %v4359_v18 = vunpack.i.h.bf16 %v4357_v43  ;;  %v4358_v19 = vunpack.i.l.bf16 %v4357_v43  ;;  %v4349_v24 = vunpack.i.h.bf16 %v4347_v54  ;;  %v4348_v40 = vunpack.i.l.bf16 %v4347_v54 }
 0x2e7   : > { %3532 = vmatmul.mubr.msk.f32.gmra.mrb[42].mxu1 %vm403_vm3, %v2819_v15 }
 0x2e8   : > { %3689 = vmatpush1.bf16.msra.mxu1 %v3688_v16  ;;  %3525 = vmatmul.mubr.msk.f32.gmra.mrb[44].mxu0 %vm403_vm3, %v2520_v20  ;;  %v3015_v13 = vsel %vm1517_vm7, %v4358_v19, %v4359_v18  ;;  %v3167_v23 = vsel %vm1672_vm8, %v4348_v40, %v4349_v24 }
 0x2e9   : > { %v4362_v17 = vpop.permute.xlu0 %4361  ;;  %v4352_v22 = vpop.permute.xlu1 %4351  ;;  %2950 = vmatprep.mubr.f32.mxu1 %v4543_v0  ;;  %v3682_v25 = vpack.c.bf16 %v3015_v13, %v3013_v21  ;;  %2616 = vmatprep.mubr.f32.mxu0 %v4543_v0 }
 0x2ea   : > { %v4364_v31 = vunpack.i.h.bf16 %v4362_v17  ;;  %v4363_v32 = vunpack.i.l.bf16 %v4362_v17  ;;  %v4354_v63 = vunpack.i.h.bf16 %v4352_v22  ;;  %v4353_v12 = vunpack.i.l.bf16 %v4352_v22 }
 0x2eb   : > { %3533 = vmatmul.mubr.msk.f32.gmra.mrb[44].mxu1 %vm403_vm3, %v2820_v51  ;;  %3683 = vmatprep.subr.bf16.mxu0 %v3682_v25 }
 0x2ec   : > { %v3014_v33 = vsel %vm1517_vm7, %v4354_v63, %v4358_v19  ;;  %v3012_v34 = vsel %vm1517_vm7, %v4353_v12, %v4343_v9  ;;  %3526 = vmatmul.mubr.msk.f32.gmra.mrb[46].mxu0 %vm403_vm3, %v2521_v26  ;;  %2956 = vmatprep.mubr.f32.mxu1 %v4543_v0  ;;  %v3169_v36 = vsel %vm1672_vm8, %v4363_v32, %v4364_v31 }
 0x2ed   : > { %v3684_v7 = vpack.c.bf16 %v3014_v33, %v3012_v34  ;;  %v4367_v39 = vpop.permute.xlu0 %4366  ;;  %v3690_v41 = vpack.c.bf16 %v3169_v36, %v3167_v23  ;;  %3100 = vmatprep.mubr.f32.mxu0 %v4543_v0 }
 0x2ee   : > { %v4369_v42 = vunpack.i.h.bf16 %v4367_v39  ;;  %v4368_v2 = vunpack.i.l.bf16 %v4367_v39 }
 0x2ef   : > { %3534 = vmatmul.mubr.msk.f32.gmra.mrb[46].mxu1 %vm403_vm3, %v2821_v35  ;;  %3685 = vmatpush1.bf16.msra.mxu0 %v3684_v7 }
 0x2f0   : > { %v3166_v38 = vsel %vm1672_vm8, %v4368_v2, %v4348_v40  ;;  %v3168_v46 = vsel %vm1672_vm8, %v4369_v42, %v4363_v32  ;;  %3691 = vmatprep.subr.bf16.mxu1 %v3690_v41  ;;  %3254 = vmatprep.mubr.f32.mxu1 %v4543_v0 }
 0x2f1   : > { %v3692_v1 = vpack.c.bf16 %v3168_v46, %v3166_v38 }
 0x2f2   : > { %3535 = vmatmul.mubr.msk.f32.vlgmr.msra.gmra.mrb[40].mxu0 %vm403_vm3, %v2980_v45 }
 0x2f3   : > { %3693 = vmatpush1.bf16.msra.mxu1 %v3692_v1  ;;  %3106 = vmatprep.mubr.f32.mxu0 %v4543_v0 }
 0x2f6   : > { %3536 = vmatmul.mubr.msk.f32.gmra.mrb[42].mxu0 %vm403_vm3, %v2981_v6  ;;  %3539 = vmatmul.mubr.msk.f32.vlgmr.msra.gmra.mrb[48].mxu1 %vm403_vm3, %v3134_v44 }
 0x2f7   : > { %3112 = vmatprep.mubr.f32.mxu0 %v4543_v0  ;;  %3260 = vmatprep.mubr.f32.mxu1 %v4543_v0 }
 0x2fa   : > { %3537 = vmatmul.mubr.msk.f32.gmra.mrb[44].mxu0 %vm403_vm3, %v2982_v5  ;;  %3540 = vmatmul.mubr.msk.f32.gmra.mrb[50].mxu1 %vm403_vm3, %v3135_v11 }
 0x2fb   : > { %3118 = vmatprep.mubr.f32.mxu0 %v4543_v0  ;;  %3266 = vmatprep.mubr.f32.mxu1 %v4543_v0 }
 0x2fe   : > { %3538 = vmatmul.mubr.msk.f32.gmra.mrb[46].mxu0 %vm403_vm3, %v2983_v47  ;;  %3541 = vmatmul.mubr.msk.f32.gmra.mrb[52].mxu1 %vm403_vm3, %v3136_v48 }
 0x2ff   : > { %3272 = vmatprep.mubr.f32.mxu1 %v4543_v0 }
 0x302   : > { %3542 = vmatmul.mubr.msk.f32.gmra.mrb[54].mxu1 %vm403_vm3, %v3137_v49 }
 0x382   : > { %v2000_v50 = vpop.f32.mrb[16].mxu1 }
 0x383   : > { %v2002_v52 = vpop.f32.mrb[17].mxu1  ;;  %v2023_v60 = vmul.f32 %v2000_v50, %v5078_v27 }
 0x384   : > { %v2024_v3 = vmul.f32 %v2002_v52, %v5082_v29 }
 0x386   : > { %v2006_v53 = vpop.f32.mrb[18].mxu1 }
 0x387   : > { %v2008_v37 = vpop.f32.mrb[19].mxu1  ;;  %v2025_v14 = vmul.f32 %v2006_v53, %v5078_v27 }
 0x388   : > { %v2026_v16 = vmul.f32 %v2008_v37, %v5082_v29 }
 0x38a   : > { %v2012_v10 = vpop.f32.mrb[20].mxu1 }
 0x38b   : > { %v2014_v56 = vpop.f32.mrb[21].mxu1  ;;  %v2027_v19 = vmul.f32 %v2012_v10, %v5078_v27 }
 0x38c   : > { %v2028_v51 = vmul.f32 %v2014_v56, %v5082_v29 }
 0x38e   : > { %v2018_v57 = vpop.f32.mrb[22].mxu1 }
 0x38f   : > { %v2020_v58 = vpop.f32.mrb[23].mxu1  ;;  %v2029_v25 = vmul.f32 %v2018_v57, %v5078_v27 }
 0x390   : > { %v2030_v63 = vmul.f32 %v2020_v58, %v5082_v29 }
 0x396   : > { %v2316_v59 = vpop.f32.mrb[24].mxu1 }
 0x397   : > { %v2339_v55 = vmul.f32 %v2316_v59, %v5080_v28  ;;  %v2318_v61 = vpop.f32.mrb[25].mxu1 }
 0x398   : > { %v2340_v0 = vmul.f32 %v2318_v61, %v5084_v30 }
 0x399   : > { %v3734_v62 = vadd.f32 %v2339_v55, %v2023_v60 }
 0x39a   : > { %v3739_v4 = vadd.f32 %v2340_v0, %v2024_v3  ;;  %v2322_v8 = vpop.f32.mrb[26].mxu1 }
 0x39b   : > { %v2341_v9 = vmul.f32 %v2322_v8, %v5080_v28  ;;  %v2324_v15 = vpop.f32.mrb[27].mxu1 }
 0x39c   : > { %v2342_v43 = vmul.f32 %v2324_v15, %v5084_v30 }
 0x39d   : > { %v3744_v54 = vadd.f32 %v2341_v9, %v2025_v14 }
 0x39e   : > { %v3749_v20 = vadd.f32 %v2342_v43, %v2026_v16  ;;  %v2328_v18 = vpop.f32.mrb[28].mxu1 }
 0x39f   : > { %v2343_v24 = vmul.f32 %v2328_v18, %v5080_v28  ;;  %v2330_v40 = vpop.f32.mrb[29].mxu1 }
 0x3a0   : > { %v2344_v21 = vmul.f32 %v2330_v40, %v5084_v30 }
 0x3a1   : > { %v3754_v13 = vadd.f32 %v2343_v24, %v2027_v19 }
 0x3a2   : > { %v3759_v17 = vadd.f32 %v2344_v21, %v2028_v51  ;;  %v2334_v22 = vpop.f32.mrb[30].mxu1 }
 0x3a3   : > { %v2345_v26 = vmul.f32 %v2334_v22, %v5080_v28  ;;  %v2478_v31 = vpop.f32.mrb[48].mxu0  ;;  %v2336_v32 = vpop.f32.mrb[31].mxu1 }
 0x3a4   : > { %v2501_v12 = vmul.f32 %v2478_v31, %v5078_v27  ;;  %v2346_v23 = vmul.f32 %v2336_v32, %v5084_v30  ;;  %v2480_v33 = vpop.f32.mrb[49].mxu0 }
 0x3a5   : > { %v3764_v34 = vadd.f32 %v2345_v26, %v2029_v25  ;;  %v2502_v35 = vmul.f32 %v2480_v33, %v5082_v29 }
 0x3a6   : > { %v3735_v36 = vadd.f32 %v3734_v62, %v2501_v12  ;;  %v3769_v7 = vadd.f32 %v2346_v23, %v2030_v63  ;;  %v2778_v39 = vpop.f32.mrb[32].mxu1 }
 0x3a7   : > { %v3740_v41 = vadd.f32 %v3739_v4, %v2502_v35  ;;  %v2484_v42 = vpop.f32.mrb[50].mxu0  ;;  %v2801_v2 = vmul.f32 %v2778_v39, %v5080_v28  ;;  %v2780_v45 = vpop.f32.mrb[33].mxu1 }
 0x3a8   : > { %v2503_v38 = vmul.f32 %v2484_v42, %v5078_v27  ;;  %v2486_v46 = vpop.f32.mrb[51].mxu0  ;;  %v2802_v1 = vmul.f32 %v2780_v45, %v5084_v30 }
 0x3a9   : > { %v3736_v6 = vadd.f32 %v3735_v36, %v2801_v2  ;;  %v2504_v44 = vmul.f32 %v2486_v46, %v5082_v29 }
 0x3aa   : > { %v3745_v5 = vadd.f32 %v3744_v54, %v2503_v38  ;;  %v3741_v11 = vadd.f32 %v3740_v41, %v2802_v1  ;;  %v2784_v47 = vpop.f32.mrb[34].mxu1 }
 0x3ab   : > { %v3750_v48 = vadd.f32 %v3749_v20, %v2504_v44  ;;  %v2490_v49 = vpop.f32.mrb[52].mxu0  ;;  %v2803_v50 = vmul.f32 %v2784_v47, %v5080_v28  ;;  %v2786_v52 = vpop.f32.mrb[35].mxu1 }
 0x3ac   : > { %v2505_v53 = vmul.f32 %v2490_v49, %v5078_v27  ;;  %v2492_v37 = vpop.f32.mrb[53].mxu0  ;;  %v2804_v10 = vmul.f32 %v2786_v52, %v5084_v30 }
 0x3ad   : > { %v3746_v56 = vadd.f32 %v3745_v5, %v2803_v50  ;;  %v2506_v57 = vmul.f32 %v2492_v37, %v5082_v29  ;;  %v3302_v37 = vpop.permute.xlu1 %3301 }
 0x3ae   : > { %v3755_v58 = vadd.f32 %v3754_v13, %v2505_v53  ;;  %v3751_v59 = vadd.f32 %v3750_v48, %v2804_v10  ;;  %v2790_v60 = vpop.f32.mrb[36].mxu1 }
 0x3af   : > { %v3760_v55 = vadd.f32 %v3759_v17, %v2506_v57  ;;  %v2496_v61 = vpop.f32.mrb[54].mxu0  ;;  %v2805_v3 = vmul.f32 %v2790_v60, %v5080_v28  ;;  %v2792_v0 = vpop.f32.mrb[37].mxu1 }
 0x3b0   : > { %v2507_v62 = vmul.f32 %v2496_v61, %v5078_v27  ;;  %v2498_v4 = vpop.f32.mrb[55].mxu0  ;;  %v2806_v8 = vmul.f32 %v2792_v0, %v5084_v30 }
 0x3b1   : > { %v3756_v14 = vadd.f32 %v3755_v58, %v2805_v3  ;;  %v2508_v9 = vmul.f32 %v2498_v4, %v5082_v29  ;;  %v3307_v4 = vpop.permute.xlu0 %3306 }
 0x3b2   : > { %v3765_v15 = vadd.f32 %v3764_v34, %v2507_v62  ;;  %v3761_v16 = vadd.f32 %v3760_v55, %v2806_v8  ;;  %v2796_v43 = vpop.f32.mrb[38].mxu1  ;;  %v4370_v8 = vld [vmem:[%s4768_s12] sm:$0xff] }
 0x3b3   : > { %v3770_v54 = vadd.f32 %v3769_v7, %v2508_v9  ;;  %v2807_v20 = vmul.f32 %v2796_v43, %v5080_v28  ;;  %v2798_v18 = vpop.f32.mrb[39].mxu1 }
 0x3b4   : > { %v2808_v19 = vmul.f32 %v2798_v18, %v5084_v30 }
 0x3b5   : > { %v3766_v24 = vadd.f32 %v3765_v15, %v2807_v20  ;;  %v4371_v15 = vld [vmem:[%s4768_s12 + $0x8] sm:$0xff] }
 0x3b6   : > { %v3771_v40 = vadd.f32 %v3770_v54, %v2808_v19  ;;  %v2940_v51 = vpop.f32.mrb[40].mxu1 }
 0x3b7   : > { %v2963_v21 = vmul.f32 %v2940_v51, %v5078_v27  ;;  %v2942_v13 = vpop.f32.mrb[41].mxu1 }
 0x3b8   : > { %v2964_v17 = vmul.f32 %v2942_v13, %v5082_v29 }
 0x3b9   : > { %v3737_v22 = vadd.f32 %v3736_v6, %v2963_v21 }
 0x3ba   : > { %v2946_v25 = vpop.f32.mrb[42].mxu1  ;;  %v3742_v26 = vadd.f32 %v3741_v11, %v2964_v17 }
 0x3bb   : > { %v2965_v31 = vmul.f32 %v2946_v25, %v5078_v27  ;;  %v2948_v32 = vpop.f32.mrb[43].mxu1 }
 0x3bc   : > { %v2966_v63 = vmul.f32 %v2948_v32, %v5082_v29 }
 0x3bd   : > { %v3747_v12 = vadd.f32 %v3746_v56, %v2965_v31 }
 0x3be   : > { %v2952_v23 = vpop.f32.mrb[44].mxu1  ;;  %v3752_v33 = vadd.f32 %v3751_v59, %v2966_v63  ;;  %v3312_v63 = vpop.permute.xlu1 %3311 }
 0x3bf   : > { %v2967_v34 = vmul.f32 %v2952_v23, %v5078_v27  ;;  %v2954_v35 = vpop.f32.mrb[45].mxu1 }
 0x3c0   : > { %v2968_v36 = vmul.f32 %v2954_v35, %v5082_v29 }
 0x3c1   : > { %v3757_v7 = vadd.f32 %v3756_v14, %v2967_v34 }
 0x3c2   : > { %v2958_v39 = vpop.f32.mrb[46].mxu1  ;;  %v3762_v41 = vadd.f32 %v3761_v16, %v2968_v36 }
 0x3c3   : > { %v2969_v42 = vmul.f32 %v2958_v39, %v5078_v27  ;;  %v2960_v2 = vpop.f32.mrb[47].mxu1 }
 0x3c4   : > { %v2970_v45 = vmul.f32 %v2960_v2, %v5082_v29 }
 0x3c5   : > { %v3102_v38 = vpop.f32.mrb[40].mxu0  ;;  %v3767_v46 = vadd.f32 %v3766_v24, %v2969_v42 }
 0x3c6   : > { %v3738_v1 = vadd.f32 %v3737_v22, %v3102_v38  ;;  %v3104_v6 = vpop.f32.mrb[41].mxu0  ;;  %v3772_v44 = vadd.f32 %v3771_v40, %v2970_v45  ;;  %v4374_v45 = vld [vmem:[%s4768_s12 + $0x20] sm:$0xff] }
 0x3c7   : > { %v3743_v5 = vadd.f32 %v3742_v26, %v3104_v6  ;;  %v4372_v26 = vld [vmem:[%s4768_s12 + $0x10] sm:$0xff]  ;;  %v4375_v6 = vld [vmem:[%s4768_s12 + $0x28] sm:$0xff] }
 0x3c9   : > { %v3108_v11 = vpop.f32.mrb[42].mxu0  ;;  %v3256_v47 = vpop.f32.mrb[48].mxu1 }
 0x3ca   : > { %v3748_v48 = vadd.f32 %v3747_v12, %v3108_v11  ;;  %v3279_v49 = vmul.f32 %v3256_v47, %v5080_v28  ;;  %v3110_v50 = vpop.f32.mrb[43].mxu0  ;;  %v3258_v52 = vpop.f32.mrb[49].mxu1  ;;  %v4373_v12 = vld [vmem:[%s4768_s12 + $0x18] sm:$0xff] }
 0x3cb   : > { %v3753_v53 = vadd.f32 %v3752_v33, %v3110_v50  ;;  %v3280_v27 = vmul.f32 %v3258_v52, %v5084_v30  ;;  %v4377_v50 = vld [vmem:[%s4768_s12 + $0x38] sm:$0xff] }
 0x3cc   : > { %v3287_v10 = vadd.f32 %v3738_v1, %v3279_v49  ;;  %v3317_v1 = vpop.permute.xlu0 %3316 }
 0x3cd   : > { %v3288_v29 = vadd.f32 %v3743_v5, %v3280_v27  ;;  %v3114_v56 = vpop.f32.mrb[44].mxu0  ;;  %v3262_v57 = vpop.f32.mrb[50].mxu1 }
 0x3ce   : > { %v3319_v58 = vadd.f32 %v3302_v37, %v3287_v10  ;;  %v3758_v59 = vadd.f32 %v3757_v7, %v3114_v56  ;;  %v3281_v60 = vmul.f32 %v3262_v57, %v5080_v28  ;;  %v3116_v55 = vpop.f32.mrb[45].mxu0  ;;  %v3264_v61 = vpop.f32.mrb[51].mxu1 }
 0x3cf   : > { %v3320_v3 = vadd.f32 %v3302_v37, %v3288_v29  ;;  %v3763_v0 = vadd.f32 %v3762_v41, %v3116_v55  ;;  %v3282_v62 = vmul.f32 %v3264_v61, %v5084_v30 }
 0x3d0   : > { %v3327_v14 = vadd.f32 %v4370_v8, %v3319_v58  ;;  %v3289_v9 = vadd.f32 %v3748_v48, %v3281_v60  ;;  %v4376_v48 = vld [vmem:[%s4768_s12 + $0x30] sm:$0xff]  ;;  %s4553_s12 = smov [#allocation10]  }
 0x3d1   : > { %v3328_v16 = vadd.f32 %v4371_v15, %v3320_v3  ;;  %v3290_v43 = vadd.f32 %v3753_v53, %v3282_v62  ;;  %v3120_v54 = vpop.f32.mrb[46].mxu0  ;;  %v3268_v20 = vpop.f32.mrb[52].mxu1  ;;  %s4468_s10 = sshll.u32 %s4553_s12, 4  ;;  %s4469_s10 = int_to_ptr.vmem [resolvable:$false] %s4468_s10 }
 0x3d2   : > { %v3335_v18 = vmax.f32 %v3327_v14, 0.0  ;;  %v3321_v19 = vadd.f32 %v3307_v4, %v3289_v9  ;;  %v3768_v24 = vadd.f32 %v3767_v46, %v3120_v54  ;;  %v3283_v40 = vmul.f32 %v3268_v20, %v5080_v28  ;;  %v3122_v51 = vpop.f32.mrb[47].mxu0  ;;  %v3270_v21 = vpop.f32.mrb[53].mxu1  ;;  %s4470_s7 = scalar_lea.vmem %s4469_s10, 2048  ;;  %p4471_p7 = scmp.lt.s32.totalorder %s5481_s14, %s4469_s10 }
 0x3d3   : > { %v3336_v13 = vmax.f32 %v3328_v16, 0.0  ;;  %v3322_v17 = vadd.f32 %v3307_v4, %v3290_v43  ;;  %v3773_v22 = vadd.f32 %v3772_v44, %v3122_v51  ;;  %v3284_v25 = vmul.f32 %v3270_v21, %v5084_v30  ;;  %p4472_p9 = scmp.lt.s32.totalorder %s4470_s7, %s4464_s19 }
 0x3d4   : > { %3343 = vst [vmem:[%s5458_s8] sm:$0xff] %v3335_v18  ;;  %v3329_v31 = vadd.f32 %v4372_v26, %v3321_v19  ;;  %v3291_v32 = vadd.f32 %v3758_v59, %v3283_v40 }
 0x3d5   : > { %3344 = vst [vmem:[%s5458_s8 + $0x8] sm:$0xff] %v3336_v13  ;;  %v3330_v23 = vadd.f32 %v4373_v12, %v3322_v17  ;;  %v3292_v33 = vadd.f32 %v3763_v0, %v3284_v25  ;;  %v3274_v34 = vpop.f32.mrb[54].mxu1  ;;  %p4473_p12 = por %p4472_p9, %p4471_p7 }
 0x3d6   : > { %v3337_v35 = vmax.f32 %v3329_v31, 0.0  ;;  %v3323_v36 = vadd.f32 %v3312_v63, %v3291_v32  ;;  %v3285_v7 = vmul.f32 %v3274_v34, %v5080_v28  ;;  %v3276_v39 = vpop.f32.mrb[55].mxu1 }
 0x3d7   : > { %v3338_v41 = vmax.f32 %v3330_v23, 0.0  ;;  %v3324_v42 = vadd.f32 %v3312_v63, %v3292_v33  ;;  %v3286_v2 = vmul.f32 %v3276_v39, %v5084_v30  ;;  %p4474_p2 = pnand %p4473_p12, %p4467_p3 }
 0x3d8   : > { %3345 = vst [vmem:[%s5458_s8 + $0x10] sm:$0xff] %v3337_v35  ;;  %v3331_v38 = vadd.f32 %v4374_v45, %v3323_v36  ;;  %v3293_v46 = vadd.f32 %v3768_v24, %v3285_v7 }
 0x3d9   : > { %3346 = vst [vmem:[%s5458_s8 + $0x18] sm:$0xff] %v3338_v41  ;;  %v3332_v44 = vadd.f32 %v4375_v6, %v3324_v42  ;;  %v3294_v28 = vadd.f32 %v3773_v22, %v3286_v2 }
 0x3da   : > { %v3339_v5 = vmax.f32 %v3331_v38, 0.0  ;;  %v3325_v11 = vadd.f32 %v3317_v1, %v3293_v46 }
 0x3db   : > { %v3340_v47 = vmax.f32 %v3332_v44, 0.0  ;;  %v3326_v30 = vadd.f32 %v3317_v1, %v3294_v28 }
 0x3dc   : > { %3347 = vst [vmem:[%s5458_s8 + $0x20] sm:$0xff] %v3339_v5  ;;  %v3333_v49 = vadd.f32 %v4376_v48, %v3325_v11 }
 0x3dd   : > { %3348 = vst [vmem:[%s5458_s8 + $0x28] sm:$0xff] %v3340_v47  ;;  %v3334_v52 = vadd.f32 %v4377_v50, %v3326_v30 }
 0x3de   : > { %v3341_v53 = vmax.f32 %v3333_v49, 0.0 }
 0x3df   : > { %v3342_v27 = vmax.f32 %v3334_v52, 0.0 }
 0x3e0   : > { %3349 = vst [vmem:[%s5458_s8 + $0x30] sm:$0xff] %v3341_v53 }
 0x3e1   : > { %3350 = vst [vmem:[%s5458_s8 + $0x38] sm:$0xff] %v3342_v27 }
 0x3e2   : > { %4477 = shalt.err (!%p4474_p2)
}
 0x3e3   : > { %s4478_s17 = scalar_lea.hbm %s5479_s30, 1024  ;;  %s4482_s8 = scalar_lea.hbm %s5534_s6, 2048 }
 0x3e4   : > { %p4479_p13 = scmp.ne.s32.totalorder %s5479_s30, %s4478_s17  ;;  %p4483_p4 = scmp.lt.u32.totalorder %s5479_s30, %s5534_s6 }
 0x3e5   : > { %p4484_p5 = scmp.lt.u32.totalorder %s4482_s8, %s4478_s17  ;;  %p4486_p11 = scmp.lt.u32.totalorder %s4478_s17, %s5479_s30 }
 0x3e6   : > { %p4480_p6 = pnand %p4479_p13, %p5559_p0 }
 0x3e7   : > { %p4485_p8 = por %p4484_p5, %p4483_p4 }
 0x3e8   : > { %p4481_p10 = pneg %p4480_p6 }
 0x3e9   : > { %p4487_p1 = por %p4486_p11, %p4485_p8 }
 0x3eb   : > { %p4488_p3 = pnand %p4487_p1, %p4481_p10 }
 0x3ed   : > { %4491 = shalt.err (!%p4488_p3)
}
 0x3ee   : > { %s4554_s18 = smov 256  }
 0x3ef   : > { %3816 = dma.vmem_to_hbm [thread:$0]  (%p5559_p0), %s5481_s14, 1024, %s5479_s30, %s3352_s25, %s4554_s18, %s4554_s18, %s4545_s29  }
 0x3f0 PF: > { %s3380_s19 = sand.u32 1, %s4522_s21   ;;  %p5560_p7 = scmp.ne.s32.totalorder %s5546_s28, 0 }
 0x3f1   : > { %p5561_p9 = scmp.ge.s32.totalorder %s4534_s24, 2  ;;  %s3381_s12 = scalar_lea.sflag [#allocation6], %s3380_s19 }
 0x3f3   : > { %p3830_p12 = pnand %p5561_p9, %p5560_p7 }
 0x3f5   : > { %4517 = dma.done.wait (!%p3830_p12), %s3381_s12, 1024  }
 0x3f6   : > { %4519 = vsyncadd (!%p3830_p12), %s3381_s12, 4294966272  ;;  %p20_p2 = scmp.ge.s32.totalorder %s4700_s26, 4   ;;  %s5562_s21 = smov %s4526_s22 }
 0x3f7   : > { %s5563_s22 = smov %s4530_s23  ;;  %s5564_s23 = smov %s4716_s11 }
 0x3f8   : > { %s5565_s24 = smov %s4700_s26  ;;  %22 = sbr.rel (!%p20_p2) target bundleno = 6 (0x6), region = 114 }
 0x3ff   :  { %3386 = vsyncpa [#allocation5], 1 }
 0x400   :  { %3388 = vsyncpa [#allocation5 + $0x1], 1 }
 0x401   :  { %3389 = vsyncpa [#allocation8], 1 }
 0x402   :  { %3390 = vsyncpa [#allocation6], 1 }
 0x403   :  { %3392 = vsyncpa [#allocation6 + $0x1], 1 }

</bundles_post_ra>
